<compile_context>
chip_gen: v7x
topology: tpu7x:2x2x1
jax: 0.10.0
libtpu: 0.0.40
codegen_flags: <defaults>
</compile_context>

<pallas_src>
import math
import jax
import jax.numpy as jnp
from jax import lax
from jax.experimental import pallas as pl
from jax.experimental.pallas import tpu as pltpu

B, S = 2, 8                 # batch, sequence
D, H, D_FF = 128, 4, 256    # d_model (lane-dense), heads, ffn hidden
D_K = D // H
N_LAYERS = 2
EPS = 1e-6


# ----------------------------- kernel ---------------------------------------


def _layer_norm(v, alpha, bias):
    # alpha * (x - mean) / (std + eps) + bias, unbiased (N-1) std.
    mean = jnp.mean(v, axis=-1, keepdims=True)
    var = jnp.sum((v - mean) ** 2, axis=-1, keepdims=True) * (1.0 / (v.shape[-1] - 1))
    # One EUP rsqrt instead of sqrt + reciprocal; eps placement differs from the
    # reference's (std + eps) by O(eps) relative error (~1e-6), negligible.
    inv = lax.rsqrt(var + EPS * EPS)
    return alpha * (v - mean) * inv + bias


def fused_encoder_kernel(x_ref, mask_ref,
                         wqkv_ref, wo_ref, ln1a_ref, ln1b_ref,
                         w1_ref, b1_ref, w2_ref, b2_ref,
                         ln2a_ref, ln2b_ref, fna_ref, fnb_ref,
                         out_ref):
    x = x_ref[0].astype(jnp.float32)                          # (S, D)

    # Additive attention bias, computed ONCE and broadcast over heads & layers.
    # NOTE: a fully-masked query row would become uniform attention (cannot
    # happen with a padding mask); same behavior as the reference.
    bias = jnp.where(mask_ref[0] == 0.0, -1e9, 0.0).astype(jnp.float32)  # (S, S)

    scale = 1.0 / math.sqrt(D_K)

    for l in range(N_LAYERS):
        # ---- residual connection 1: pre-norm multi-head self-attention ----
        xn = _layer_norm(x, ln1a_ref[l], ln1b_ref[l])
        # Fused QKV projection: one bf16 (S,D)@(D,3D) MXU pass, f32 accumulate.
        qkv = jnp.dot(xn.astype(jnp.bfloat16), wqkv_ref[l],
                      preferred_element_type=jnp.float32)     # (S, 3D)
        q = qkv[:, :D]
        k = qkv[:, D:2 * D]
        v = qkv[:, 2 * D:]

        # Heads -> leading batch dim via reshape + lane-layout-aware einshape
        # (no per-head slice/concat copies).
        qh = pltpu.einshape("shd->hsd", q.reshape(S, H, D_K)).astype(jnp.bfloat16)
        kh = pltpu.einshape("shd->hsd", k.reshape(S, H, D_K)).astype(jnp.bfloat16)
        vh = pltpu.einshape("shd->hsd", v.reshape(S, H, D_K)).astype(jnp.bfloat16)

        # One batched QK^T over all heads + broadcast mask bias.
        scores = jnp.einsum('hqd,hkd->hqk', qh, kh,
                            preferred_element_type=jnp.float32) * scale
        scores = scores + bias[None, :, :]
        scores = scores - jnp.max(scores, axis=-1, keepdims=True)
        p = jnp.exp(scores)
        p = p * pl.reciprocal(jnp.sum(p, axis=-1, keepdims=True), approx=True)

        # One batched PV, heads merged back to lanes, single Wo matmul.
        o = jnp.einsum('hqk,hkd->hqd', p.astype(jnp.bfloat16), vh,
                       preferred_element_type=jnp.float32)    # (H, S, D_K)
        o = pltpu.einshape("hsd->shd", o).reshape(S, D)        # (S, D)
        # TODO(synk): dropout inside the residual connections is identity in eval mode.
        x = x + jnp.dot(o.astype(jnp.bfloat16), wo_ref[l],
                        preferred_element_type=jnp.float32)

        # ---- residual connection 2: pre-norm feed-forward ----
        xn = _layer_norm(x, ln2a_ref[l], ln2b_ref[l])
        h1 = jnp.maximum(
            jnp.dot(xn.astype(jnp.bfloat16), w1_ref[l],
                    preferred_element_type=jnp.float32) + b1_ref[l], 0.0)
        x = x + jnp.dot(h1.astype(jnp.bfloat16), w2_ref[l],
                        preferred_element_type=jnp.float32) + b2_ref[l]

    # ---- final LayerNormalization ----
    out_ref[0] = _layer_norm(x, fna_ref[...], fnb_ref[...]).astype(out_ref.dtype)


# ----------------------------- wrapper ---------------------------------------


@jax.jit
def encoder_forward(x, mask, params, norm_alpha, norm_bias):
    wq, wk, wv, wo, ln1a, ln1b, w1, b1, w2, b2, ln2a, ln2b = params
    # Pack Q|K|V and cast matmul weights to bf16 (f32 accumulation in-kernel);
    # element-wise params (LN scales/biases, FFN biases) stay f32.
    wqkv = jnp.concatenate([wq, wk, wv], axis=-1).astype(jnp.bfloat16)  # (L,D,3D)
    wo_b = wo.astype(jnp.bfloat16)
    w1_b = w1.astype(jnp.bfloat16)
    w2_b = w2.astype(jnp.bfloat16)

    row_spec = pl.BlockSpec((1, S, D), lambda b: (b, 0, 0))
    mask_spec = pl.BlockSpec((1, S, S), lambda b: (b, 0, 0))
    full_vmem = pl.BlockSpec(memory_space=pltpu.MemorySpace.VMEM)

    return pl.pallas_call(
        fused_encoder_kernel,
        out_shape=jax.ShapeDtypeStruct((B, S, D), x.dtype),
        grid=(B,),
        in_specs=[row_spec, mask_spec] + [full_vmem] * 12,
        out_specs=row_spec,
        compiler_params=pltpu.CompilerParams(
            dimension_semantics=("parallel",),          # shards batch across TCs on v7x
            vmem_limit_bytes=32 * 1024 * 1024),
    )(x, mask, wqkv, wo_b, ln1a, ln1b, w1_b, b1, w2_b, b2,
      ln2a, ln2b, norm_alpha, norm_bias)


# ----------------------------- reference -------------------------------------


def encoder_ref(x, mask, params, norm_alpha, norm_bias):
    wq, wk, wv, wo, ln1a, ln1b, w1, b1, w2, b2, ln2a, ln2b = params

    def ln(v, a, b):
        mean = v.mean(-1, keepdims=True)
        var = ((v - mean) ** 2).sum(-1, keepdims=True) / (v.shape[-1] - 1)
        return a * (v - mean) / (jnp.sqrt(var) + EPS) + b

    for l in range(N_LAYERS):
        xn = ln(x, ln1a[l], ln1b[l])
        q = xn @ wq[l]
        k = xn @ wk[l]
        v = xn @ wv[l]
        qh = q.reshape(B, S, H, D_K).transpose(0, 2, 1, 3)
        kh = k.reshape(B, S, H, D_K).transpose(0, 2, 1, 3)
        vh = v.reshape(B, S, H, D_K).transpose(0, 2, 1, 3)
        scores = jnp.einsum('bhqd,bhkd->bhqk', qh, kh) / math.sqrt(D_K)
        scores = jnp.where(mask[:, None, :, :] == 0, -1e9, scores)
        p = jax.nn.softmax(scores, axis=-1)
        o = jnp.einsum('bhqk,bhkd->bhqd', p, vh)
        o = o.transpose(0, 2, 1, 3).reshape(B, S, D) @ wo[l]
        x = x + o
        xn = ln(x, ln2a[l], ln2b[l])
        x = x + (jnp.maximum(xn @ w1[l] + b1[l], 0.0) @ w2[l] + b2[l])
    return ln(x, norm_alpha, norm_bias)


# ----------------------------- main -------------------------------------------


def init_params(key):
    ks = jax.random.split(key, 12)

    def nrm(k, shape, scale=0.05):
        return scale * jax.random.normal(k, shape, jnp.float32)

    wq = nrm(ks[0], (N_LAYERS, D, D))
    wk = nrm(ks[1], (N_LAYERS, D, D))
    wv = nrm(ks[2], (N_LAYERS, D, D))
    wo = nrm(ks[3], (N_LAYERS, D, D))
    ln1a = 1.0 + nrm(ks[4], (N_LAYERS, 1, D), 0.1)
    ln1b = nrm(ks[5], (N_LAYERS, 1, D), 0.1)
    w1 = nrm(ks[6], (N_LAYERS, D, D_FF))
    b1 = nrm(ks[7], (N_LAYERS, 1, D_FF), 0.02)
    w2 = nrm(ks[8], (N_LAYERS, D_FF, D))
    b2 = nrm(ks[9], (N_LAYERS, 1, D), 0.02)
    ln2a = 1.0 + nrm(ks[10], (N_LAYERS, 1, D), 0.1)
    ln2b = nrm(ks[11], (N_LAYERS, 1, D), 0.1)
    return (wq, wk, wv, wo, ln1a, ln1b, w1, b1, w2, b2, ln2a, ln2b)


if __name__ == "__main__":
    root = jax.random.PRNGKey(0)
    k_x, k_p, k_n = jax.random.split(root, 3)

    x = jax.random.normal(k_x, (B, S, D), jnp.float32)

    # Padding mask: batch 0 sees all 8 tokens, batch 1 only the first 5.
    lens = jnp.array([8, 5], jnp.int32)
    valid = (jnp.arange(S)[None, :] < lens[:, None]).astype(jnp.float32)   # (B, S)
    mask = jnp.broadcast_to(valid[:, None, :], (B, S, S))                   # (B, S, S)

    params = init_params(k_p)
    kn1, kn2 = jax.random.split(k_n)
    norm_alpha = 1.0 + 0.1 * jax.random.normal(kn1, (1, D), jnp.float32)
    norm_bias = 0.1 * jax.random.normal(kn2, (1, D), jnp.float32)

    out = encoder_forward(x, mask, params, norm_alpha, norm_bias)
    out = jax.block_until_ready(out)

    ref = encoder_ref(x, mask, params, norm_alpha, norm_bias)
    assert out.shape == (B, S, D)
    err = jnp.max(jnp.abs(out - ref))
    # Tolerance 2e-2 (vs f32 reference): bf16 matmul operands + approx softmax
    # reciprocal contribute ~1e-2-level worst-case deviation.
    assert jnp.allclose(out, ref, rtol=2e-2, atol=2e-2), f"max abs diff {err}"

    print("KERNEL_OK")
</pallas_src>

<mosaic_0001>
module attributes {stable_mosaic.version = 11 : i64} {
  func.func @fused_encoder_kernel(%arg0: i32, %arg1: memref<1x8x128xf32, #tpu.memory_space<vmem>>, %arg2: memref<1x8x8xf32, #tpu.memory_space<vmem>>, %arg3: memref<2x128x384xbf16, #tpu.memory_space<vmem>>, %arg4: memref<2x128x128xbf16, #tpu.memory_space<vmem>>, %arg5: memref<2x1x128xf32, #tpu.memory_space<vmem>>, %arg6: memref<2x1x128xf32, #tpu.memory_space<vmem>>, %arg7: memref<2x128x256xbf16, #tpu.memory_space<vmem>>, %arg8: memref<2x1x256xf32, #tpu.memory_space<vmem>>, %arg9: memref<2x256x128xbf16, #tpu.memory_space<vmem>>, %arg10: memref<2x1x128xf32, #tpu.memory_space<vmem>>, %arg11: memref<2x1x128xf32, #tpu.memory_space<vmem>>, %arg12: memref<2x1x128xf32, #tpu.memory_space<vmem>>, %arg13: memref<1x128xf32, #tpu.memory_space<vmem>>, %arg14: memref<1x128xf32, #tpu.memory_space<vmem>>, %arg15: memref<1x8x128xf32, #tpu.memory_space<vmem>>) attributes {dimension_semantics = [#tpu.dimension_semantics<parallel>], iteration_bounds = array<i64: 2>, scalar_prefetch = 0 : i64, scratch_operands = 0 : i64, tpu.core_type = #tpu.core_type<tc>, window_params = [{transform_indices = @transform_0, window_bounds = array<i64: 1, 8, 128>}, {transform_indices = @transform_1, window_bounds = array<i64: 1, 8, 8>}, {pipeline_mode = #tpu.pipeline_mode<synchronous>, transform_indices = @transform_2, window_bounds = array<i64: 2, 128, 384>}, {pipeline_mode = #tpu.pipeline_mode<synchronous>, transform_indices = @transform_3, window_bounds = array<i64: 2, 128, 128>}, {pipeline_mode = #tpu.pipeline_mode<synchronous>, transform_indices = @transform_4, window_bounds = array<i64: 2, 1, 128>}, {pipeline_mode = #tpu.pipeline_mode<synchronous>, transform_indices = @transform_5, window_bounds = array<i64: 2, 1, 128>}, {pipeline_mode = #tpu.pipeline_mode<synchronous>, transform_indices = @transform_6, window_bounds = array<i64: 2, 128, 256>}, {pipeline_mode = #tpu.pipeline_mode<synchronous>, transform_indices = @transform_7, window_bounds = array<i64: 2, 1, 256>}, {pipeline_mode = #tpu.pipeline_mode<synchronous>, transform_indices = @transform_8, window_bounds = array<i64: 2, 256, 128>}, {pipeline_mode = #tpu.pipeline_mode<synchronous>, transform_indices = @transform_9, window_bounds = array<i64: 2, 1, 128>}, {pipeline_mode = #tpu.pipeline_mode<synchronous>, transform_indices = @transform_10, window_bounds = array<i64: 2, 1, 128>}, {pipeline_mode = #tpu.pipeline_mode<synchronous>, transform_indices = @transform_11, window_bounds = array<i64: 2, 1, 128>}, {pipeline_mode = #tpu.pipeline_mode<synchronous>, transform_indices = @transform_12, window_bounds = array<i64: 1, 128>}, {pipeline_mode = #tpu.pipeline_mode<synchronous>, transform_indices = @transform_13, window_bounds = array<i64: 1, 128>}, {transform_indices = @transform_14, window_bounds = array<i64: 1, 8, 128>}]} {
    %c0 = arith.constant 0 : index
    %c0_0 = arith.constant 0 : index
    %c0_1 = arith.constant 0 : index
    %0 = vector.load %arg1[%c0, %c0_0, %c0_1] : memref<1x8x128xf32, #tpu.memory_space<vmem>>, vector<1x8x128xf32>
    %1 = vector.shape_cast %0 : vector<1x8x128xf32> to vector<8x128xf32>
    %c0_2 = arith.constant 0 : index
    %c0_3 = arith.constant 0 : index
    %c0_4 = arith.constant 0 : index
    %2 = vector.load %arg2[%c0_2, %c0_3, %c0_4] : memref<1x8x8xf32, #tpu.memory_space<vmem>>, vector<1x8x8xf32>
    %3 = vector.shape_cast %2 : vector<1x8x8xf32> to vector<8x8xf32>
    %cst = arith.constant 0.000000e+00 : f32
    %4 = vector.broadcast %cst : f32 to vector<8x8xf32>
    %5 = arith.cmpf oeq, %3, %4 : vector<8x8xf32>
    %cst_5 = arith.constant -1.000000e+09 : f32
    %cst_6 = arith.constant 0.000000e+00 : f32
    %6 = vector.broadcast %cst_5 : f32 to vector<8x8xf32>
    %7 = vector.broadcast %cst_6 : f32 to vector<8x8xf32>
    %8 = arith.select %5, %6, %7 : vector<8x8xi1>, vector<8x8xf32>
    %c0_7 = arith.constant 0 : index
    %c0_8 = arith.constant 0 : index
    %c0_9 = arith.constant 0 : index
    %9 = vector.load %arg5[%c0_7, %c0_8, %c0_9] : memref<2x1x128xf32, #tpu.memory_space<vmem>>, vector<1x1x128xf32>
    %10 = vector.shape_cast %9 : vector<1x1x128xf32> to vector<1x128xf32>
    %c0_10 = arith.constant 0 : index
    %c0_11 = arith.constant 0 : index
    %c0_12 = arith.constant 0 : index
    %11 = vector.load %arg6[%c0_10, %c0_11, %c0_12] : memref<2x1x128xf32, #tpu.memory_space<vmem>>, vector<1x1x128xf32>
    %12 = vector.shape_cast %11 : vector<1x1x128xf32> to vector<1x128xf32>
    %cst_13 = arith.constant dense<0.000000e+00> : vector<8xf32>
    %13 = vector.multi_reduction <add>, %1, %cst_13 [1] : vector<8x128xf32> to vector<8xf32>
    %14 = vector.shape_cast %13 : vector<8xf32> to vector<8x1xf32>
    %cst_14 = arith.constant 1.280000e+02 : f32
    %15 = vector.broadcast %cst_14 : f32 to vector<8x1xf32>
    %16 = arith.divf %14, %15 : vector<8x1xf32>
    %17 = vector.broadcast %16 : vector<8x1xf32> to vector<8x128xf32>
    %18 = arith.subf %1, %17 : vector<8x128xf32>
    %19 = arith.mulf %18, %18 : vector<8x128xf32>
    %cst_15 = arith.constant dense<0.000000e+00> : vector<8xf32>
    %20 = vector.multi_reduction <add>, %19, %cst_15 [1] : vector<8x128xf32> to vector<8xf32>
    %21 = vector.shape_cast %20 : vector<8xf32> to vector<8x1xf32>
    %cst_16 = arith.constant 0.00787401571 : f32
    %22 = vector.broadcast %cst_16 : f32 to vector<8x1xf32>
    %23 = arith.mulf %21, %22 : vector<8x1xf32>
    %cst_17 = arith.constant 9.99999996E-13 : f32
    %24 = vector.broadcast %cst_17 : f32 to vector<8x1xf32>
    %25 = arith.addf %23, %24 : vector<8x1xf32>
    %26 = math.rsqrt %25 : vector<8x1xf32>
    %27 = vector.broadcast %16 : vector<8x1xf32> to vector<8x128xf32>
    %28 = arith.subf %1, %27 : vector<8x128xf32>
    %29 = vector.broadcast %10 : vector<1x128xf32> to vector<8x128xf32>
    %30 = arith.mulf %29, %28 : vector<8x128xf32>
    %31 = vector.broadcast %26 : vector<8x1xf32> to vector<8x128xf32>
    %32 = arith.mulf %30, %31 : vector<8x128xf32>
    %33 = vector.broadcast %12 : vector<1x128xf32> to vector<8x128xf32>
    %34 = arith.addf %32, %33 : vector<8x128xf32>
    %35 = arith.truncf %34 : vector<8x128xf32> to vector<8x128xbf16>
    %c0_18 = arith.constant 0 : index
    %c0_19 = arith.constant 0 : index
    %c0_20 = arith.constant 0 : index
    %36 = vector.load %arg3[%c0_18, %c0_19, %c0_20] : memref<2x128x384xbf16, #tpu.memory_space<vmem>>, vector<1x128x384xbf16>
    %37 = vector.shape_cast %36 : vector<1x128x384xbf16> to vector<128x384xbf16>
    %cst_21 = arith.constant dense<0.000000e+00> : vector<8x384xf32>
    %38 = tpu.matmul %35, %37, %cst_21 {dimension_numbers = #tpu.dot_dimension_numbers<[1], [0], [0], [1], [0, 0, 1, 1], [], []>} : vector<8x128xbf16>, vector<128x384xbf16>, vector<8x384xf32> -> vector<8x384xf32>
    %39 = vector.extract_strided_slice %38 {offsets = [0, 0], sizes = [8, 128], strides = [1, 1]} : vector<8x384xf32> to vector<8x128xf32>
    %40 = vector.extract_strided_slice %38 {offsets = [0, 128], sizes = [8, 128], strides = [1, 1]} : vector<8x384xf32> to vector<8x128xf32>
    %41 = vector.extract_strided_slice %38 {offsets = [0, 256], sizes = [8, 128], strides = [1, 1]} : vector<8x384xf32> to vector<8x128xf32>
    %42 = vector.shape_cast %39 : vector<8x128xf32> to vector<8x4x32xf32>
    %43 = tpu.transpose %42, [1, 0, 2] : vector<8x4x32xf32> -> vector<4x8x32xf32>
    %44 = arith.truncf %43 : vector<4x8x32xf32> to vector<4x8x32xbf16>
    %45 = vector.shape_cast %40 : vector<8x128xf32> to vector<8x4x32xf32>
    %46 = tpu.transpose %45, [1, 0, 2] : vector<8x4x32xf32> -> vector<4x8x32xf32>
    %47 = arith.truncf %46 : vector<4x8x32xf32> to vector<4x8x32xbf16>
    %48 = vector.shape_cast %41 : vector<8x128xf32> to vector<8x4x32xf32>
    %49 = tpu.transpose %48, [1, 0, 2] : vector<8x4x32xf32> -> vector<4x8x32xf32>
    %50 = arith.truncf %49 : vector<4x8x32xf32> to vector<4x8x32xbf16>
    "tpu.trace_start"() <{level = 10 : i32, message = "hqd,hkd->hqk"}> : () -> ()
    %cst_22 = arith.constant dense<0.000000e+00> : vector<4x8x8xf32>
    %51 = tpu.matmul %44, %47, %cst_22 {dimension_numbers = #tpu.dot_dimension_numbers<[2], [2], [1], [1], [0, 0, 0, 1, 1, 1], [0], [0]>} : vector<4x8x32xbf16>, vector<4x8x32xbf16>, vector<4x8x8xf32> -> vector<4x8x8xf32>
    "tpu.trace_stop"() : () -> ()
    %cst_23 = arith.constant 0.176776692 : f32
    %52 = vector.broadcast %cst_23 : f32 to vector<4x8x8xf32>
    %53 = arith.mulf %51, %52 : vector<4x8x8xf32>
    %54 = vector.shape_cast %8 : vector<8x8xf32> to vector<1x8x8xf32>
    %55 = vector.broadcast %54 : vector<1x8x8xf32> to vector<4x8x8xf32>
    %56 = arith.addf %53, %55 : vector<4x8x8xf32>
    %cst_24 = arith.constant dense<0xFF800000> : vector<4x8xf32>
    %57 = vector.multi_reduction <maximumf>, %56, %cst_24 [2] : vector<4x8x8xf32> to vector<4x8xf32>
    %58 = vector.shape_cast %57 : vector<4x8xf32> to vector<4x8x1xf32>
    %59 = vector.broadcast %58 : vector<4x8x1xf32> to vector<4x8x8xf32>
    %60 = arith.subf %56, %59 : vector<4x8x8xf32>
    %61 = math.exp %60 : vector<4x8x8xf32>
    %cst_25 = arith.constant dense<0.000000e+00> : vector<4x8xf32>
    %62 = vector.multi_reduction <add>, %61, %cst_25 [2] : vector<4x8x8xf32> to vector<4x8xf32>
    %63 = vector.shape_cast %62 : vector<4x8xf32> to vector<4x8x1xf32>
    %64 = tpu.reciprocal %63 {approx = true} : vector<4x8x1xf32> -> vector<4x8x1xf32>
    %65 = vector.broadcast %64 : vector<4x8x1xf32> to vector<4x8x8xf32>
    %66 = arith.mulf %61, %65 : vector<4x8x8xf32>
    %67 = arith.truncf %66 : vector<4x8x8xf32> to vector<4x8x8xbf16>
    "tpu.trace_start"() <{level = 10 : i32, message = "hqk,hkd->hqd"}> : () -> ()
    %cst_26 = arith.constant dense<0.000000e+00> : vector<4x8x32xf32>
    %68 = tpu.matmul %67, %50, %cst_26 {dimension_numbers = #tpu.dot_dimension_numbers<[2], [1], [1], [2], [0, 0, 0, 1, 1, 2], [0], [0]>} : vector<4x8x8xbf16>, vector<4x8x32xbf16>, vector<4x8x32xf32> -> vector<4x8x32xf32>
    "tpu.trace_stop"() : () -> ()
    %69 = tpu.transpose %68, [1, 0, 2] : vector<4x8x32xf32> -> vector<8x4x32xf32>
    %70 = vector.shape_cast %69 : vector<8x4x32xf32> to vector<8x128xf32>
    %71 = arith.truncf %70 : vector<8x128xf32> to vector<8x128xbf16>
    %c0_27 = arith.constant 0 : index
    %c0_28 = arith.constant 0 : index
    %c0_29 = arith.constant 0 : index
    %72 = vector.load %arg4[%c0_27, %c0_28, %c0_29] : memref<2x128x128xbf16, #tpu.memory_space<vmem>>, vector<1x128x128xbf16>
    %73 = vector.shape_cast %72 : vector<1x128x128xbf16> to vector<128x128xbf16>
    %cst_30 = arith.constant dense<0.000000e+00> : vector<8x128xf32>
    %74 = tpu.matmul %71, %73, %cst_30 {dimension_numbers = #tpu.dot_dimension_numbers<[1], [0], [0], [1], [0, 0, 1, 1], [], []>} : vector<8x128xbf16>, vector<128x128xbf16>, vector<8x128xf32> -> vector<8x128xf32>
    %75 = arith.addf %1, %74 : vector<8x128xf32>
    %c0_31 = arith.constant 0 : index
    %c0_32 = arith.constant 0 : index
    %c0_33 = arith.constant 0 : index
    %76 = vector.load %arg11[%c0_31, %c0_32, %c0_33] : memref<2x1x128xf32, #tpu.memory_space<vmem>>, vector<1x1x128xf32>
    %77 = vector.shape_cast %76 : vector<1x1x128xf32> to vector<1x128xf32>
    %c0_34 = arith.constant 0 : index
    %c0_35 = arith.constant 0 : index
    %c0_36 = arith.constant 0 : index
    %78 = vector.load %arg12[%c0_34, %c0_35, %c0_36] : memref<2x1x128xf32, #tpu.memory_space<vmem>>, vector<1x1x128xf32>
    %79 = vector.shape_cast %78 : vector<1x1x128xf32> to vector<1x128xf32>
    %cst_37 = arith.constant dense<0.000000e+00> : vector<8xf32>
    %80 = vector.multi_reduction <add>, %75, %cst_37 [1] : vector<8x128xf32> to vector<8xf32>
    %81 = vector.shape_cast %80 : vector<8xf32> to vector<8x1xf32>
    %cst_38 = arith.constant 1.280000e+02 : f32
    %82 = vector.broadcast %cst_38 : f32 to vector<8x1xf32>
    %83 = arith.divf %81, %82 : vector<8x1xf32>
    %84 = vector.broadcast %83 : vector<8x1xf32> to vector<8x128xf32>
    %85 = arith.subf %75, %84 : vector<8x128xf32>
    %86 = arith.mulf %85, %85 : vector<8x128xf32>
    %cst_39 = arith.constant dense<0.000000e+00> : vector<8xf32>
    %87 = vector.multi_reduction <add>, %86, %cst_39 [1] : vector<8x128xf32> to vector<8xf32>
    %88 = vector.shape_cast %87 : vector<8xf32> to vector<8x1xf32>
    %cst_40 = arith.constant 0.00787401571 : f32
    %89 = vector.broadcast %cst_40 : f32 to vector<8x1xf32>
    %90 = arith.mulf %88, %89 : vector<8x1xf32>
    %cst_41 = arith.constant 9.99999996E-13 : f32
    %91 = vector.broadcast %cst_41 : f32 to vector<8x1xf32>
    %92 = arith.addf %90, %91 : vector<8x1xf32>
    %93 = math.rsqrt %92 : vector<8x1xf32>
    %94 = vector.broadcast %83 : vector<8x1xf32> to vector<8x128xf32>
    %95 = arith.subf %75, %94 : vector<8x128xf32>
    %96 = vector.broadcast %77 : vector<1x128xf32> to vector<8x128xf32>
    %97 = arith.mulf %96, %95 : vector<8x128xf32>
    %98 = vector.broadcast %93 : vector<8x1xf32> to vector<8x128xf32>
    %99 = arith.mulf %97, %98 : vector<8x128xf32>
    %100 = vector.broadcast %79 : vector<1x128xf32> to vector<8x128xf32>
    %101 = arith.addf %99, %100 : vector<8x128xf32>
    %102 = arith.truncf %101 : vector<8x128xf32> to vector<8x128xbf16>
    %c0_42 = arith.constant 0 : index
    %c0_43 = arith.constant 0 : index
    %c0_44 = arith.constant 0 : index
    %103 = vector.load %arg7[%c0_42, %c0_43, %c0_44] : memref<2x128x256xbf16, #tpu.memory_space<vmem>>, vector<1x128x256xbf16>
    %104 = vector.shape_cast %103 : vector<1x128x256xbf16> to vector<128x256xbf16>
    %cst_45 = arith.constant dense<0.000000e+00> : vector<8x256xf32>
    %105 = tpu.matmul %102, %104, %cst_45 {dimension_numbers = #tpu.dot_dimension_numbers<[1], [0], [0], [1], [0, 0, 1, 1], [], []>} : vector<8x128xbf16>, vector<128x256xbf16>, vector<8x256xf32> -> vector<8x256xf32>
    %c0_46 = arith.constant 0 : index
    %c0_47 = arith.constant 0 : index
    %c0_48 = arith.constant 0 : index
    %106 = vector.load %arg8[%c0_46, %c0_47, %c0_48] : memref<2x1x256xf32, #tpu.memory_space<vmem>>, vector<1x1x256xf32>
    %107 = vector.shape_cast %106 : vector<1x1x256xf32> to vector<1x256xf32>
    %108 = vector.broadcast %107 : vector<1x256xf32> to vector<8x256xf32>
    %109 = arith.addf %105, %108 : vector<8x256xf32>
    %cst_49 = arith.constant 0.000000e+00 : f32
    %110 = vector.broadcast %cst_49 : f32 to vector<8x256xf32>
    %111 = arith.maximumf %109, %110 : vector<8x256xf32>
    %112 = arith.truncf %111 : vector<8x256xf32> to vector<8x256xbf16>
    %c0_50 = arith.constant 0 : index
    %c0_51 = arith.constant 0 : index
    %c0_52 = arith.constant 0 : index
    %113 = vector.load %arg9[%c0_50, %c0_51, %c0_52] : memref<2x256x128xbf16, #tpu.memory_space<vmem>>, vector<1x256x128xbf16>
    %114 = vector.shape_cast %113 : vector<1x256x128xbf16> to vector<256x128xbf16>
    %cst_53 = arith.constant dense<0.000000e+00> : vector<8x128xf32>
    %115 = tpu.matmul %112, %114, %cst_53 {dimension_numbers = #tpu.dot_dimension_numbers<[1], [0], [0], [1], [0, 0, 1, 1], [], []>} : vector<8x256xbf16>, vector<256x128xbf16>, vector<8x128xf32> -> vector<8x128xf32>
    %116 = arith.addf %75, %115 : vector<8x128xf32>
    %c0_54 = arith.constant 0 : index
    %c0_55 = arith.constant 0 : index
    %c0_56 = arith.constant 0 : index
    %117 = vector.load %arg10[%c0_54, %c0_55, %c0_56] : memref<2x1x128xf32, #tpu.memory_space<vmem>>, vector<1x1x128xf32>
    %118 = vector.shape_cast %117 : vector<1x1x128xf32> to vector<1x128xf32>
    %119 = vector.broadcast %118 : vector<1x128xf32> to vector<8x128xf32>
    %120 = arith.addf %116, %119 : vector<8x128xf32>
    %c1 = arith.constant 1 : index
    %c0_57 = arith.constant 0 : index
    %c0_58 = arith.constant 0 : index
    %121 = vector.load %arg5[%c1, %c0_57, %c0_58] : memref<2x1x128xf32, #tpu.memory_space<vmem>>, vector<1x1x128xf32>
    %122 = vector.shape_cast %121 : vector<1x1x128xf32> to vector<1x128xf32>
    %c1_59 = arith.constant 1 : index
    %c0_60 = arith.constant 0 : index
    %c0_61 = arith.constant 0 : index
    %123 = vector.load %arg6[%c1_59, %c0_60, %c0_61] : memref<2x1x128xf32, #tpu.memory_space<vmem>>, vector<1x1x128xf32>
    %124 = vector.shape_cast %123 : vector<1x1x128xf32> to vector<1x128xf32>
    %cst_62 = arith.constant dense<0.000000e+00> : vector<8xf32>
    %125 = vector.multi_reduction <add>, %120, %cst_62 [1] : vector<8x128xf32> to vector<8xf32>
    %126 = vector.shape_cast %125 : vector<8xf32> to vector<8x1xf32>
    %cst_63 = arith.constant 1.280000e+02 : f32
    %127 = vector.broadcast %cst_63 : f32 to vector<8x1xf32>
    %128 = arith.divf %126, %127 : vector<8x1xf32>
    %129 = vector.broadcast %128 : vector<8x1xf32> to vector<8x128xf32>
    %130 = arith.subf %120, %129 : vector<8x128xf32>
    %131 = arith.mulf %130, %130 : vector<8x128xf32>
    %cst_64 = arith.constant dense<0.000000e+00> : vector<8xf32>
    %132 = vector.multi_reduction <add>, %131, %cst_64 [1] : vector<8x128xf32> to vector<8xf32>
    %133 = vector.shape_cast %132 : vector<8xf32> to vector<8x1xf32>
    %cst_65 = arith.constant 0.00787401571 : f32
    %134 = vector.broadcast %cst_65 : f32 to vector<8x1xf32>
    %135 = arith.mulf %133, %134 : vector<8x1xf32>
    %cst_66 = arith.constant 9.99999996E-13 : f32
    %136 = vector.broadcast %cst_66 : f32 to vector<8x1xf32>
    %137 = arith.addf %135, %136 : vector<8x1xf32>
    %138 = math.rsqrt %137 : vector<8x1xf32>
    %139 = vector.broadcast %128 : vector<8x1xf32> to vector<8x128xf32>
    %140 = arith.subf %120, %139 : vector<8x128xf32>
    %141 = vector.broadcast %122 : vector<1x128xf32> to vector<8x128xf32>
    %142 = arith.mulf %141, %140 : vector<8x128xf32>
    %143 = vector.broadcast %138 : vector<8x1xf32> to vector<8x128xf32>
    %144 = arith.mulf %142, %143 : vector<8x128xf32>
    %145 = vector.broadcast %124 : vector<1x128xf32> to vector<8x128xf32>
    %146 = arith.addf %144, %145 : vector<8x128xf32>
    %147 = arith.truncf %146 : vector<8x128xf32> to vector<8x128xbf16>
    %c1_67 = arith.constant 1 : index
    %c0_68 = arith.constant 0 : index
    %c0_69 = arith.constant 0 : index
    %148 = vector.load %arg3[%c1_67, %c0_68, %c0_69] : memref<2x128x384xbf16, #tpu.memory_space<vmem>>, vector<1x128x384xbf16>
    %149 = vector.shape_cast %148 : vector<1x128x384xbf16> to vector<128x384xbf16>
    %cst_70 = arith.constant dense<0.000000e+00> : vector<8x384xf32>
    %150 = tpu.matmul %147, %149, %cst_70 {dimension_numbers = #tpu.dot_dimension_numbers<[1], [0], [0], [1], [0, 0, 1, 1], [], []>} : vector<8x128xbf16>, vector<128x384xbf16>, vector<8x384xf32> -> vector<8x384xf32>
    %151 = vector.extract_strided_slice %150 {offsets = [0, 0], sizes = [8, 128], strides = [1, 1]} : vector<8x384xf32> to vector<8x128xf32>
    %152 = vector.extract_strided_slice %150 {offsets = [0, 128], sizes = [8, 128], strides = [1, 1]} : vector<8x384xf32> to vector<8x128xf32>
    %153 = vector.extract_strided_slice %150 {offsets = [0, 256], sizes = [8, 128], strides = [1, 1]} : vector<8x384xf32> to vector<8x128xf32>
    %154 = vector.shape_cast %151 : vector<8x128xf32> to vector<8x4x32xf32>
    %155 = tpu.transpose %154, [1, 0, 2] : vector<8x4x32xf32> -> vector<4x8x32xf32>
    %156 = arith.truncf %155 : vector<4x8x32xf32> to vector<4x8x32xbf16>
    %157 = vector.shape_cast %152 : vector<8x128xf32> to vector<8x4x32xf32>
    %158 = tpu.transpose %157, [1, 0, 2] : vector<8x4x32xf32> -> vector<4x8x32xf32>
    %159 = arith.truncf %158 : vector<4x8x32xf32> to vector<4x8x32xbf16>
    %160 = vector.shape_cast %153 : vector<8x128xf32> to vector<8x4x32xf32>
    %161 = tpu.transpose %160, [1, 0, 2] : vector<8x4x32xf32> -> vector<4x8x32xf32>
    %162 = arith.truncf %161 : vector<4x8x32xf32> to vector<4x8x32xbf16>
    "tpu.trace_start"() <{level = 10 : i32, message = "hqd,hkd->hqk"}> : () -> ()
    %cst_71 = arith.constant dense<0.000000e+00> : vector<4x8x8xf32>
    %163 = tpu.matmul %156, %159, %cst_71 {dimension_numbers = #tpu.dot_dimension_numbers<[2], [2], [1], [1], [0, 0, 0, 1, 1, 1], [0], [0]>} : vector<4x8x32xbf16>, vector<4x8x32xbf16>, vector<4x8x8xf32> -> vector<4x8x8xf32>
    "tpu.trace_stop"() : () -> ()
    %cst_72 = arith.constant 0.176776692 : f32
    %164 = vector.broadcast %cst_72 : f32 to vector<4x8x8xf32>
    %165 = arith.mulf %163, %164 : vector<4x8x8xf32>
    %166 = vector.shape_cast %8 : vector<8x8xf32> to vector<1x8x8xf32>
    %167 = vector.broadcast %166 : vector<1x8x8xf32> to vector<4x8x8xf32>
    %168 = arith.addf %165, %167 : vector<4x8x8xf32>
    %cst_73 = arith.constant dense<0xFF800000> : vector<4x8xf32>
    %169 = vector.multi_reduction <maximumf>, %168, %cst_73 [2] : vector<4x8x8xf32> to vector<4x8xf32>
    %170 = vector.shape_cast %169 : vector<4x8xf32> to vector<4x8x1xf32>
    %171 = vector.broadcast %170 : vector<4x8x1xf32> to vector<4x8x8xf32>
    %172 = arith.subf %168, %171 : vector<4x8x8xf32>
    %173 = math.exp %172 : vector<4x8x8xf32>
    %cst_74 = arith.constant dense<0.000000e+00> : vector<4x8xf32>
    %174 = vector.multi_reduction <add>, %173, %cst_74 [2] : vector<4x8x8xf32> to vector<4x8xf32>
    %175 = vector.shape_cast %174 : vector<4x8xf32> to vector<4x8x1xf32>
    %176 = tpu.reciprocal %175 {approx = true} : vector<4x8x1xf32> -> vector<4x8x1xf32>
    %177 = vector.broadcast %176 : vector<4x8x1xf32> to vector<4x8x8xf32>
    %178 = arith.mulf %173, %177 : vector<4x8x8xf32>
    %179 = arith.truncf %178 : vector<4x8x8xf32> to vector<4x8x8xbf16>
    "tpu.trace_start"() <{level = 10 : i32, message = "hqk,hkd->hqd"}> : () -> ()
    %cst_75 = arith.constant dense<0.000000e+00> : vector<4x8x32xf32>
    %180 = tpu.matmul %179, %162, %cst_75 {dimension_numbers = #tpu.dot_dimension_numbers<[2], [1], [1], [2], [0, 0, 0, 1, 1, 2], [0], [0]>} : vector<4x8x8xbf16>, vector<4x8x32xbf16>, vector<4x8x32xf32> -> vector<4x8x32xf32>
    "tpu.trace_stop"() : () -> ()
    %181 = tpu.transpose %180, [1, 0, 2] : vector<4x8x32xf32> -> vector<8x4x32xf32>
    %182 = vector.shape_cast %181 : vector<8x4x32xf32> to vector<8x128xf32>
    %183 = arith.truncf %182 : vector<8x128xf32> to vector<8x128xbf16>
    %c1_76 = arith.constant 1 : index
    %c0_77 = arith.constant 0 : index
    %c0_78 = arith.constant 0 : index
    %184 = vector.load %arg4[%c1_76, %c0_77, %c0_78] : memref<2x128x128xbf16, #tpu.memory_space<vmem>>, vector<1x128x128xbf16>
    %185 = vector.shape_cast %184 : vector<1x128x128xbf16> to vector<128x128xbf16>
    %cst_79 = arith.constant dense<0.000000e+00> : vector<8x128xf32>
    %186 = tpu.matmul %183, %185, %cst_79 {dimension_numbers = #tpu.dot_dimension_numbers<[1], [0], [0], [1], [0, 0, 1, 1], [], []>} : vector<8x128xbf16>, vector<128x128xbf16>, vector<8x128xf32> -> vector<8x128xf32>
    %187 = arith.addf %120, %186 : vector<8x128xf32>
    %c1_80 = arith.constant 1 : index
    %c0_81 = arith.constant 0 : index
    %c0_82 = arith.constant 0 : index
    %188 = vector.load %arg11[%c1_80, %c0_81, %c0_82] : memref<2x1x128xf32, #tpu.memory_space<vmem>>, vector<1x1x128xf32>
    %189 = vector.shape_cast %188 : vector<1x1x128xf32> to vector<1x128xf32>
    %c1_83 = arith.constant 1 : index
    %c0_84 = arith.constant 0 : index
    %c0_85 = arith.constant 0 : index
    %190 = vector.load %arg12[%c1_83, %c0_84, %c0_85] : memref<2x1x128xf32, #tpu.memory_space<vmem>>, vector<1x1x128xf32>
    %191 = vector.shape_cast %190 : vector<1x1x128xf32> to vector<1x128xf32>
    %cst_86 = arith.constant dense<0.000000e+00> : vector<8xf32>
    %192 = vector.multi_reduction <add>, %187, %cst_86 [1] : vector<8x128xf32> to vector<8xf32>
    %193 = vector.shape_cast %192 : vector<8xf32> to vector<8x1xf32>
    %cst_87 = arith.constant 1.280000e+02 : f32
    %194 = vector.broadcast %cst_87 : f32 to vector<8x1xf32>
    %195 = arith.divf %193, %194 : vector<8x1xf32>
    %196 = vector.broadcast %195 : vector<8x1xf32> to vector<8x128xf32>
    %197 = arith.subf %187, %196 : vector<8x128xf32>
    %198 = arith.mulf %197, %197 : vector<8x128xf32>
    %cst_88 = arith.constant dense<0.000000e+00> : vector<8xf32>
    %199 = vector.multi_reduction <add>, %198, %cst_88 [1] : vector<8x128xf32> to vector<8xf32>
    %200 = vector.shape_cast %199 : vector<8xf32> to vector<8x1xf32>
    %cst_89 = arith.constant 0.00787401571 : f32
    %201 = vector.broadcast %cst_89 : f32 to vector<8x1xf32>
    %202 = arith.mulf %200, %201 : vector<8x1xf32>
    %cst_90 = arith.constant 9.99999996E-13 : f32
    %203 = vector.broadcast %cst_90 : f32 to vector<8x1xf32>
    %204 = arith.addf %202, %203 : vector<8x1xf32>
    %205 = math.rsqrt %204 : vector<8x1xf32>
    %206 = vector.broadcast %195 : vector<8x1xf32> to vector<8x128xf32>
    %207 = arith.subf %187, %206 : vector<8x128xf32>
    %208 = vector.broadcast %189 : vector<1x128xf32> to vector<8x128xf32>
    %209 = arith.mulf %208, %207 : vector<8x128xf32>
    %210 = vector.broadcast %205 : vector<8x1xf32> to vector<8x128xf32>
    %211 = arith.mulf %209, %210 : vector<8x128xf32>
    %212 = vector.broadcast %191 : vector<1x128xf32> to vector<8x128xf32>
    %213 = arith.addf %211, %212 : vector<8x128xf32>
    %214 = arith.truncf %213 : vector<8x128xf32> to vector<8x128xbf16>
    %c1_91 = arith.constant 1 : index
    %c0_92 = arith.constant 0 : index
    %c0_93 = arith.constant 0 : index
    %215 = vector.load %arg7[%c1_91, %c0_92, %c0_93] : memref<2x128x256xbf16, #tpu.memory_space<vmem>>, vector<1x128x256xbf16>
    %216 = vector.shape_cast %215 : vector<1x128x256xbf16> to vector<128x256xbf16>
    %cst_94 = arith.constant dense<0.000000e+00> : vector<8x256xf32>
    %217 = tpu.matmul %214, %216, %cst_94 {dimension_numbers = #tpu.dot_dimension_numbers<[1], [0], [0], [1], [0, 0, 1, 1], [], []>} : vector<8x128xbf16>, vector<128x256xbf16>, vector<8x256xf32> -> vector<8x256xf32>
    %c1_95 = arith.constant 1 : index
    %c0_96 = arith.constant 0 : index
    %c0_97 = arith.constant 0 : index
    %218 = vector.load %arg8[%c1_95, %c0_96, %c0_97] : memref<2x1x256xf32, #tpu.memory_space<vmem>>, vector<1x1x256xf32>
    %219 = vector.shape_cast %218 : vector<1x1x256xf32> to vector<1x256xf32>
    %220 = vector.broadcast %219 : vector<1x256xf32> to vector<8x256xf32>
    %221 = arith.addf %217, %220 : vector<8x256xf32>
    %cst_98 = arith.constant 0.000000e+00 : f32
    %222 = vector.broadcast %cst_98 : f32 to vector<8x256xf32>
    %223 = arith.maximumf %221, %222 : vector<8x256xf32>
    %224 = arith.truncf %223 : vector<8x256xf32> to vector<8x256xbf16>
    %c1_99 = arith.constant 1 : index
    %c0_100 = arith.constant 0 : index
    %c0_101 = arith.constant 0 : index
    %225 = vector.load %arg9[%c1_99, %c0_100, %c0_101] : memref<2x256x128xbf16, #tpu.memory_space<vmem>>, vector<1x256x128xbf16>
    %226 = vector.shape_cast %225 : vector<1x256x128xbf16> to vector<256x128xbf16>
    %cst_102 = arith.constant dense<0.000000e+00> : vector<8x128xf32>
    %227 = tpu.matmul %224, %226, %cst_102 {dimension_numbers = #tpu.dot_dimension_numbers<[1], [0], [0], [1], [0, 0, 1, 1], [], []>} : vector<8x256xbf16>, vector<256x128xbf16>, vector<8x128xf32> -> vector<8x128xf32>
    %228 = arith.addf %187, %227 : vector<8x128xf32>
    %c1_103 = arith.constant 1 : index
    %c0_104 = arith.constant 0 : index
    %c0_105 = arith.constant 0 : index
    %229 = vector.load %arg10[%c1_103, %c0_104, %c0_105] : memref<2x1x128xf32, #tpu.memory_space<vmem>>, vector<1x1x128xf32>
    %230 = vector.shape_cast %229 : vector<1x1x128xf32> to vector<1x128xf32>
    %231 = vector.broadcast %230 : vector<1x128xf32> to vector<8x128xf32>
    %232 = arith.addf %228, %231 : vector<8x128xf32>
    %c0_106 = arith.constant 0 : index
    %c0_107 = arith.constant 0 : index
    %233 = vector.load %arg13[%c0_106, %c0_107] : memref<1x128xf32, #tpu.memory_space<vmem>>, vector<1x128xf32>
    %c0_108 = arith.constant 0 : index
    %c0_109 = arith.constant 0 : index
    %234 = vector.load %arg14[%c0_108, %c0_109] : memref<1x128xf32, #tpu.memory_space<vmem>>, vector<1x128xf32>
    %cst_110 = arith.constant dense<0.000000e+00> : vector<8xf32>
    %235 = vector.multi_reduction <add>, %232, %cst_110 [1] : vector<8x128xf32> to vector<8xf32>
    %236 = vector.shape_cast %235 : vector<8xf32> to vector<8x1xf32>
    %cst_111 = arith.constant 1.280000e+02 : f32
    %237 = vector.broadcast %cst_111 : f32 to vector<8x1xf32>
    %238 = arith.divf %236, %237 : vector<8x1xf32>
    %239 = vector.broadcast %238 : vector<8x1xf32> to vector<8x128xf32>
    %240 = arith.subf %232, %239 : vector<8x128xf32>
    %241 = arith.mulf %240, %240 : vector<8x128xf32>
    %cst_112 = arith.constant dense<0.000000e+00> : vector<8xf32>
    %242 = vector.multi_reduction <add>, %241, %cst_112 [1] : vector<8x128xf32> to vector<8xf32>
    %243 = vector.shape_cast %242 : vector<8xf32> to vector<8x1xf32>
    %cst_113 = arith.constant 0.00787401571 : f32
    %244 = vector.broadcast %cst_113 : f32 to vector<8x1xf32>
    %245 = arith.mulf %243, %244 : vector<8x1xf32>
    %cst_114 = arith.constant 9.99999996E-13 : f32
    %246 = vector.broadcast %cst_114 : f32 to vector<8x1xf32>
    %247 = arith.addf %245, %246 : vector<8x1xf32>
    %248 = math.rsqrt %247 : vector<8x1xf32>
    %249 = vector.broadcast %238 : vector<8x1xf32> to vector<8x128xf32>
    %250 = arith.subf %232, %249 : vector<8x128xf32>
    %251 = vector.broadcast %233 : vector<1x128xf32> to vector<8x128xf32>
    %252 = arith.mulf %251, %250 : vector<8x128xf32>
    %253 = vector.broadcast %248 : vector<8x1xf32> to vector<8x128xf32>
    %254 = arith.mulf %252, %253 : vector<8x128xf32>
    %255 = vector.broadcast %234 : vector<1x128xf32> to vector<8x128xf32>
    %256 = arith.addf %254, %255 : vector<8x128xf32>
    %c0_115 = arith.constant 0 : index
    %c0_116 = arith.constant 0 : index
    %c0_117 = arith.constant 0 : index
    %257 = vector.load %arg15[%c0_115, %c0_116, %c0_117] : memref<1x8x128xf32, #tpu.memory_space<vmem>>, vector<1x8x128xf32>
    %258 = vector.shape_cast %257 : vector<1x8x128xf32> to vector<8x128xf32>
    %259 = vector.shape_cast %256 : vector<8x128xf32> to vector<1x8x128xf32>
    tpu.vector_store %arg15[%c0_115, %c0_116, %c0_117], %259 {strides = array<i32>} : memref<1x8x128xf32, #tpu.memory_space<vmem>>, vector<1x8x128xf32>,
    return
  }
  func.func @transform_0(%arg0: i32) -> (i32, i32, i32) {
    %c0_i32 = arith.constant 0 : i32
    %c0_i32_0 = arith.constant 0 : i32
    %c0_i32_1 = arith.constant 0 : i32
    return %arg0, %c0_i32, %c0_i32_0 : i32, i32, i32
  }
  func.func @transform_1(%arg0: i32) -> (i32, i32, i32) {
    %c0_i32 = arith.constant 0 : i32
    %c0_i32_0 = arith.constant 0 : i32
    %c0_i32_1 = arith.constant 0 : i32
    return %arg0, %c0_i32, %c0_i32_0 : i32, i32, i32
  }
  func.func @transform_2(%arg0: i32) -> (i32, i32, i32) {
    %c0_i32 = arith.constant 0 : i32
    %c0_i32_0 = arith.constant 0 : i32
    %c0_i32_1 = arith.constant 0 : i32
    %c0_i32_2 = arith.constant 0 : i32
    return %c0_i32, %c0_i32_0, %c0_i32_1 : i32, i32, i32
  }
  func.func @transform_3(%arg0: i32) -> (i32, i32, i32) {
    %c0_i32 = arith.constant 0 : i32
    %c0_i32_0 = arith.constant 0 : i32
    %c0_i32_1 = arith.constant 0 : i32
    %c0_i32_2 = arith.constant 0 : i32
    return %c0_i32, %c0_i32_0, %c0_i32_1 : i32, i32, i32
  }
  func.func @transform_4(%arg0: i32) -> (i32, i32, i32) {
    %c0_i32 = arith.constant 0 : i32
    %c0_i32_0 = arith.constant 0 : i32
    %c0_i32_1 = arith.constant 0 : i32
    %c0_i32_2 = arith.constant 0 : i32
    return %c0_i32, %c0_i32_0, %c0_i32_1 : i32, i32, i32
  }
  func.func @transform_5(%arg0: i32) -> (i32, i32, i32) {
    %c0_i32 = arith.constant 0 : i32
    %c0_i32_0 = arith.constant 0 : i32
    %c0_i32_1 = arith.constant 0 : i32
    %c0_i32_2 = arith.constant 0 : i32
    return %c0_i32, %c0_i32_0, %c0_i32_1 : i32, i32, i32
  }
  func.func @transform_6(%arg0: i32) -> (i32, i32, i32) {
    %c0_i32 = arith.constant 0 : i32
    %c0_i32_0 = arith.constant 0 : i32
    %c0_i32_1 = arith.constant 0 : i32
    %c0_i32_2 = arith.constant 0 : i32
    return %c0_i32, %c0_i32_0, %c0_i32_1 : i32, i32, i32
  }
  func.func @transform_7(%arg0: i32) -> (i32, i32, i32) {
    %c0_i32 = arith.constant 0 : i32
    %c0_i32_0 = arith.constant 0 : i32
    %c0_i32_1 = arith.constant 0 : i32
    %c0_i32_2 = arith.constant 0 : i32
    return %c0_i32, %c0_i32_0, %c0_i32_1 : i32, i32, i32
  }
  func.func @transform_8(%arg0: i32) -> (i32, i32, i32) {
    %c0_i32 = arith.constant 0 : i32
    %c0_i32_0 = arith.constant 0 : i32
    %c0_i32_1 = arith.constant 0 : i32
    %c0_i32_2 = arith.constant 0 : i32
    return %c0_i32, %c0_i32_0, %c0_i32_1 : i32, i32, i32
  }
  func.func @transform_9(%arg0: i32) -> (i32, i32, i32) {
    %c0_i32 = arith.constant 0 : i32
    %c0_i32_0 = arith.constant 0 : i32
    %c0_i32_1 = arith.constant 0 : i32
    %c0_i32_2 = arith.constant 0 : i32
    return %c0_i32, %c0_i32_0, %c0_i32_1 : i32, i32, i32
  }
  func.func @transform_10(%arg0: i32) -> (i32, i32, i32) {
    %c0_i32 = arith.constant 0 : i32
    %c0_i32_0 = arith.constant 0 : i32
    %c0_i32_1 = arith.constant 0 : i32
    %c0_i32_2 = arith.constant 0 : i32
    return %c0_i32, %c0_i32_0, %c0_i32_1 : i32, i32, i32
  }
  func.func @transform_11(%arg0: i32) -> (i32, i32, i32) {
    %c0_i32 = arith.constant 0 : i32
    %c0_i32_0 = arith.constant 0 : i32
    %c0_i32_1 = arith.constant 0 : i32
    %c0_i32_2 = arith.constant 0 : i32
    return %c0_i32, %c0_i32_0, %c0_i32_1 : i32, i32, i32
  }
  func.func @transform_12(%arg0: i32) -> (i32, i32) {
    %c0_i32 = arith.constant 0 : i32
    %c0_i32_0 = arith.constant 0 : i32
    %c0_i32_1 = arith.constant 0 : i32
    return %c0_i32, %c0_i32_0 : i32, i32
  }
  func.func @transform_13(%arg0: i32) -> (i32, i32) {
    %c0_i32 = arith.constant 0 : i32
    %c0_i32_0 = arith.constant 0 : i32
    %c0_i32_1 = arith.constant 0 : i32
    return %c0_i32, %c0_i32_0 : i32, i32
  }
  func.func @transform_14(%arg0: i32) -> (i32, i32, i32) {
    %c0_i32 = arith.constant 0 : i32
    %c0_i32_0 = arith.constant 0 : i32
    %c0_i32_1 = arith.constant 0 : i32
    return %arg0, %c0_i32, %c0_i32_0 : i32, i32, i32
  }
}

</mosaic_0001>

<bundles_post_ra>
// kernel: encoder_forward.1
= control target key start
LH: loop header
LB: loop body
LE: loop exit
PB: predicated region body
PF: predicated region fallthrough
CT: control target
= control target key end

     0   :  { %19 = vsyncpa [#allocation3], 0  ;;  %s6036_s0 = inlined_call_operand.vmem [shape: f32[2,8,128], index: 0, kind: input, shape index: {}]   ;;  %s6037_s1 = inlined_call_operand.vmem [shape: f32[2,8,8], index: 1, kind: input, shape index: {}]   ;;  %s6038_s2 = inlined_call_operand.vmem [shape: bf16[2,128,384], index: 2, kind: input, shape index: {}]   ;;  %s6039_s3 = inlined_call_operand.vmem [shape: bf16[2,128,128], index: 3, kind: input, shape index: {}]   ;;  %s6040_s4 = inlined_call_operand.vmem [shape: f32[2,1,128], index: 4, kind: input, shape index: {}]   ;;  %s6041_s5 = inlined_call_operand.vmem [shape: f32[2,1,128], index: 5, kind: input, shape index: {}]   ;;  %s6042_s6 = inlined_call_operand.vmem [shape: bf16[2,128,256], index: 6, kind: input, shape index: {}]   ;;  %s6043_s7 = inlined_call_operand.vmem [shape: f32[2,1,256], index: 7, kind: input, shape index: {}]   ;;  %s6044_s8 = inlined_call_operand.vmem [shape: bf16[2,256,128], index: 8, kind: input, shape index: {}]   ;;  %s6045_s9 = inlined_call_operand.vmem [shape: f32[2,1,128], index: 9, kind: input, shape index: {}]   ;;  %s6046_s10 = inlined_call_operand.vmem [shape: f32[2,1,128], index: 10, kind: input, shape index: {}]   ;;  %s6047_s11 = inlined_call_operand.vmem [shape: f32[2,1,128], index: 11, kind: input, shape index: {}]   ;;  %s6048_s12 = inlined_call_operand.vmem [shape: f32[1,128], index: 12, kind: input, shape index: {}]   ;;  %s6049_s13 = inlined_call_operand.vmem [shape: f32[1,128], index: 13, kind: input, shape index: {}]   ;;  %s6050_s14 = inlined_call_operand.hbm [shape: f32[2,8,128], index: 14, kind: output, shape index: {}]  }
   0x1   :  { %21 = vsyncpa [#allocation3 + $0x1], 0  ;;  %s5101_s29 = smov 0   ;;  %s5103_s30 = smov 0  }
   0x2   :  { %s5105_s15 = smov 0   ;;  %s5107_s16 = smov 0  }
   0x3 LB: > { %6057 = sst [smem:[#allocation5_spill]] %s5003_s29  ;;  %s5122_s17 = sadd.s32 4294967295, %s5015_s16   ;;  %s5015_s16 = sphi %s5107_s16, %s6068_s16   ;;  %s5011_s15 = sphi %s5105_s15, %s6070_s15   ;;  %s5007_s30 = sphi %s5103_s30, %s6072_s30   ;;  %s5003_s29 = sphi %s5101_s29, %s6071_s29  }
   0x4   : > { %6058 = sst [smem:[#allocation6_spill]] %s5011_s15  ;;  %s4130_s18 = sadd.s32 4294967294, %s5015_s16  }
   0x5   : > { %6059 = sst [smem:[#allocation7_spill]] %s5015_s16  ;;  %s5126_s19 = sadd.s32 1, %s5015_s16  }
   0x6   : > { %6060 = sst [smem:[#allocation8_spill]] %s5126_s19  ;;  %s338_s20 = sadd.s32 1, %s5011_s15 }
   0x7   : > { %s335_s21 = ssub.s32 %s5015_s16, %s5126_s19  ;;  %p348_p0 = scmp.ne.s32.totalorder %s5011_s15, %s5007_s30 }
   0x8   : > { %p336_p1 = scmp.eq.s32.totalorder %s335_s21, 0  ;;  %p349_p2 = scmp.eq.s32.totalorder %s5122_s17, 1 }
   0x9   : > { %p354_p3 = scmp.ne.s32.totalorder %s5007_s30, %s5003_s29  ;;  %p355_p4 = scmp.eq.s32.totalorder %s4130_s18, 1 }
   0xa   : > { %s5137_s22 = scalar_select %p336_p1, %s5011_s15, %s338_s20  }
   0xb   : > { %p5139_p5 = por %p349_p2, %p348_p0  ;;  %p5143_p6 = por %p355_p4, %p354_p3 }
   0xc   : > { %6061 = sst [smem:[#allocation9_spill]] %s5137_s22  ;;  %p4133_p7 = scmp.ge.s32.totalorder %s5015_s16, 1 }
   0xd   : > { %s6063_s24 = scalar_select %p5143_p6, 1, 0 }
   0xe   : > { %p423_p8 = scmp.lt.s32.totalorder %s5015_s16, 3 }
   0xf   : > { %6064 = sst [smem:[#allocation10_spill]] %s6063_s24 }
  0x10   : > { %p424_p9 = pnand %p4133_p7, %p423_p8 }
  0x11   : > { %p472_p10 = scmp.lt.s32.totalorder (!%p424_p9), %s5122_s17, 1  ;;  %v5017_v0 = vmov (!%p424_p9), 0.0   ;;  %v4750_v2 = vld [vmem:[%s6038_s2 + $0x4] ss:$12 sps:$4 sm:$0xff] (!%p424_p9)   ;;  %v4752_v3 = vld [vmem:[%s6038_s2] ss:$12 sps:$4 sm:$0xff] (!%p424_p9)   ;;  %v770_v51 = vlaneseq (!%p424_p9) }
  0x12   : > { %427 = sbr.rel (%p424_p9) target bundleno = 5517 (0x158d), region = 76  ;;  %4527 = vmatprep.subr.bf16.mxu1 (!%p424_p9), %v5017_v0  ;;  %v4753_v4 = vld [vmem:[%s6038_s2 + $0x8] ss:$12 sps:$4 sm:$0xff] (!%p424_p9)   ;;  %674 = vmatprep.subr.bf16.mxu0 (!%p424_p9), %v4750_v2  ;;  %v4756_v6 = vld [vmem:[%s6038_s2 + $0x18] ss:$12 sps:$4 sm:$0xff] (!%p424_p9)   ;;  %v5018_v25 = vmov (!%p424_p9), 0  }
  0x13   : > { %v4754_v5 = vld [vmem:[%s6038_s2 + $0x1c] ss:$12 sps:$4 sm:$0xff] (!%p424_p9)   ;;  %4528 = vmatpush3.bf16.msra.mxu1 (!%p424_p9), %v4753_v4  ;;  %v4757_v7 = vld [vmem:[%s6038_s2 + $0x20] ss:$12 sps:$4 sm:$0xff] (!%p424_p9)   ;;  %675 = vmatpush1.bf16.msra.mxu0 (!%p424_p9), %v4752_v3  ;;  %v4761_v9 = vld [vmem:[%s6038_s2 + $0x38] ss:$12 sps:$4 sm:$0xff] (!%p424_p9)  }
  0x14   : > { %v4758_v8 = vld [vmem:[%s6038_s2 + $0x34] ss:$12 sps:$4 sm:$0xff] (!%p424_p9)   ;;  %4529 = vmatprep.subr.bf16.mxu1 (!%p424_p9), %v5017_v0  ;;  %676 = vmatprep.subr.bf16.mxu0 (!%p424_p9), %v4754_v5  ;;  %v4760_v10 = vld [vmem:[%s6038_s2 + $0x30] ss:$12 sps:$4 sm:$0xff] (!%p424_p9)   ;;  %v4762_v15 = vld [vmem:[%s6038_s2 + $0x4c] ss:$12 sps:$4 sm:$0xff] (!%p424_p9)  }
  0x15   : > { %v4764_v16 = vld [vmem:[%s6038_s2 + $0x48] ss:$12 sps:$4 sm:$0xff] (!%p424_p9)   ;;  %v4765_v17 = vld [vmem:[%s6038_s2 + $0x50] ss:$12 sps:$4 sm:$0xff] (!%p424_p9)   ;;  %v4768_v19 = vld [vmem:[%s6038_s2 + $0x60] ss:$12 sps:$4 sm:$0xff] (!%p424_p9)   ;;  %706 = vmatprep.mubr.bf16.mxu0 (!%p424_p9), %v5018_v25 }
  0x16   : > { %v4766_v18 = vld [vmem:[%s6038_s2 + $0x64] ss:$12 sps:$4 sm:$0xff] (!%p424_p9)   ;;  %v4769_v20 = vld [vmem:[%s6038_s2 + $0x68] ss:$12 sps:$4 sm:$0xff] (!%p424_p9)   ;;  %v4773_v23 = vld [vmem:[%s6038_s2 + $0x80] ss:$12 sps:$4 sm:$0xff] (!%p424_p9)  }
  0x17   : > { %4530 = vmatpush3.bf16.msra.mxu1 (!%p424_p9), %v4757_v7  ;;  %677 = vmatpush1.bf16.msra.mxu0 (!%p424_p9), %v4756_v6  ;;  %v4770_v21 = vld [vmem:[%s6038_s2 + $0x7c] ss:$12 sps:$4 sm:$0xff] (!%p424_p9)   ;;  %v4772_v22 = vld [vmem:[%s6038_s2 + $0x78] ss:$12 sps:$4 sm:$0xff] (!%p424_p9)   ;;  %v4774_v24 = vld [vmem:[%s6038_s2 + $0x94] ss:$12 sps:$4 sm:$0xff] (!%p424_p9)  }
  0x18   : > { %4531 = vmatprep.subr.bf16.mxu1 (!%p424_p9), %v5017_v0  ;;  %678 = vmatprep.subr.bf16.mxu0 (!%p424_p9), %v4758_v8  ;;  %vm5019_vm0 = vmmov (!%p424_p9), 0   ;;  %v4776_v26 = vld [vmem:[%s6038_s2 + $0x90] ss:$12 sps:$4 sm:$0xff] (!%p424_p9)   ;;  %v4777_v27 = vld [vmem:[%s6038_s2 + $0x98] ss:$12 sps:$4 sm:$0xff] (!%p424_p9)   ;;  %s5020_s15 = smov (!%p424_p9), 32  }
  0x19   : > { %s5152_s25 = scalar_select %p472_p10, %s5122_s17, 1  ;;  %4543 = vmatprep.mubr.msk.bf16.mxu1 %vm5019_vm0, %v5017_v0  ;;  %v4778_v28 = vld [vmem:[%s6038_s2 + $0xac] ss:$12 sps:$4 sm:$0xff]   ;;  %v4780_v29 = vld [vmem:[%s6038_s2 + $0xa8] ss:$12 sps:$4 sm:$0xff]   ;;  %v5270_v55 = vshrl.u32 %v770_v51, 7 }
  0x1a   : > { %v4781_v30 = vld [vmem:[%s6038_s2 + $0xb0] ss:$12 sps:$4 sm:$0xff]   ;;  %v4137_v34 = vld [vmem:[%s6040_s4] ss:$0 sm:$0xff]  ;;  %s5021_s22 = smov 96   ;;  %s5022_s29 = smov 64  }
  0x1b   : > { %s4135_s26 = sshll.u32 %s5152_s25, 3  ;;  %4532 = vmatpush3.bf16.msra.mxu1 %v4761_v9  ;;  %679 = vmatpush1.bf16.msra.mxu0 %v4760_v10  ;;  %v4138_v37 = vld [vmem:[%s6041_s5] ss:$0 sm:$0xff]  ;;  %v5023_v49 = vmov 1983009808   ;;  %vm1205_vm1 = vcmask 261120  }
  0x1c   : > { %s5160_s18 = scalar_lea.vmem %s6036_s0, %s4135_s26  ;;  %4533 = vmatprep.subr.bf16.mxu1 %v5017_v0  ;;  %680 = vmatprep.subr.bf16.mxu0 %v4762_v15  ;;  %v768_v50 = vunpack.c.l.s4 %v5023_v49  ;;  %v5024_v52 = vmov 1934713408   ;;  %s479_s24 = scalar_lea.vmem %s6037_s1, %s4135_s26  ;;  %vm1398_vm3 = vcmask 64512   ;;  %vm1450_vm4 = vcmask 1043456  }
  0x1d   : > { %v481_v1 = vld [vmem:[%s5160_s18] sm:$0xff]  ;;  %v800_v53 = vunpack.c.l.s4 %v5024_v52  ;;  %vm1781_vm5 = vcmask 523264   ;;  %vm1783_vm6 = vcmask 785408   ;;  %s469_s27 = sand.u32 1, %s5007_s30  }
  0x1e   : > { %487 = vadd.xlane.f32.xlu0 %v481_v1  ;;  %v769_v54 = vunpack.c.0.s8 %v768_v50  ;;  %s4134_s28 = sshll.u32 %s469_s27, 3  ;;  %s4046_s26 = scalar_lea.sflag [#allocation3], %s469_s27 }
  0x1f   : > { %681 = vmatpush1.bf16.msra.mxu0 %v4764_v16  ;;  %4534 = vmatpush3.bf16.msra.mxu1 %v4765_v17  ;;  %v801_v58 = vunpack.c.0.s8 %v800_v53 }
  0x20   : > { %4535 = vmatprep.subr.bf16.mxu1 %v5017_v0  ;;  %682 = vmatprep.subr.bf16.mxu0 %v4766_v18  ;;  %v5273_v59 = vsub.s32 %v769_v54, %v5270_v55 }
  0x21   : > { %v5276_v2 = vsub.s32 %v801_v58, %v5270_v55 }
  0x23   : > { %683 = vmatpush1.bf16.msra.mxu0 %v4768_v19  ;;  %4536 = vmatpush3.bf16.msra.mxu1 %v4769_v20 }
  0x24   : > { %684 = vmatprep.subr.bf16.mxu0 %v4770_v21  ;;  %4537 = vmatprep.subr.bf16.mxu1 %v5017_v0 }
  0x27   : > { %685 = vmatpush1.bf16.msra.mxu0 %v4772_v22  ;;  %4538 = vmatpush3.bf16.msra.mxu1 %v4773_v23 }
  0x28   : > { %686 = vmatprep.subr.bf16.mxu0 %v4774_v24  ;;  %4539 = vmatprep.subr.bf16.mxu1 %v5017_v0 }
  0x2b   : > { %687 = vmatpush1.bf16.msra.mxu0 %v4776_v26  ;;  %4540 = vmatpush3.bf16.msra.mxu1 %v4777_v27 }
  0x2c   : > { %688 = vmatprep.subr.bf16.mxu0 %v4778_v28  ;;  %4541 = vmatprep.subr.bf16.mxu1 %v5017_v0 }
  0x2f   : > { %689 = vmatpush1.bf16.msra.mxu0 %v4780_v29  ;;  %4542 = vmatpush3.bf16.msra.mxu1 %v4781_v30 }
  0x30   : > { %4547 = vmatprep.subr.bf16.mxu1 %v5017_v0  ;;  %4571 = vmatprep.subr.bf16.mxu0 %v5017_v0 }
  0xab   : > { %v488_v11 = vpop.xlane.xlu0 %487 }
  0xac   : > { %v490_v12 = vmul.f32 0.0078125, %v488_v11 }
  0xae   : > { %v491_v13 = vsub.f32 %v481_v1, %v490_v12 }
  0xb0   : > { %v492_v14 = vmul.f32 %v491_v13, %v491_v13  ;;  %v504_v35 = vmul.f32 %v4137_v34, %v491_v13 }
  0xb2   : > { %493 = vadd.xlane.f32.xlu0 %v492_v14 }
 0x13f   : > { %v494_v31 = vpop.xlane.xlu0 %493 }
 0x140   : > { %v495_v32 = vmul.f32 0.007874016, %v494_v31 }
 0x142   : > { %v496_v33 = vadd.f32 1e-12, %v495_v32 }
 0x144   : > { %4910 = vrsqrt.f32 %v496_v33 }
 0x14e   : > { %v4911_v36 = vpop.eup %4910 }
 0x14f   : > { %v505_v38 = vmul.f32 %v4911_v36, %v504_v35 }
 0x151   : > { %v512_v39 = vadd.f32 %v4138_v37, %v505_v38 }
 0x153   : > { %v513_v40 = vpack.c.bf16 %v512_v39, %v512_v39 }
 0x155   : > { %707 = vmatmul.mubr.bf16.vlgmr.msra.gmra.mrb[0].mxu0 %v513_v40  ;;  %4544 = vmatmul.mubr.bf16.vlgmr.msra.gmra.mrb[0].mxu1 %v513_v40 }
 0x156   : > { %4549 = vmatprep.mubr.msk.bf16.mxu1 %vm5019_vm0, %v5017_v0  ;;  %4573 = vmatprep.mubr.msk.bf16.mxu0 %vm5019_vm0, %v5017_v0 }
 0x228   : > { %v5257_v41 = vpop.f32.mrb[0].mxu0  ;;  %v5259_v42 = vpop.f32.mrb[0].mxu1 }
 0x229   : > { %v710_v43 = vpop.f32.mrb[1].mxu0  ;;  %v4545_v44 = vpop.f32.mrb[1].mxu1 }
 0x22a   : > { %v752_v45 = vpop.f32.mrb[2].mxu1  ;;  %912 = vrot.lane.b32.xlu0 %v710_v43, %s5020_s15  ;;  %906 = vrot.lane.b32.xlu1 %v710_v43, %s5021_s22  ;;  %v712_v46 = vpop.f32.mrb[2].mxu0 }
 0x22b   : > { %v713_v47 = vpop.f32.mrb[3].mxu0  ;;  %v4546_v48 = vpop.f32.mrb[3].mxu1 }
 0x22e   : > { %909 = vrot.lane.b32.xlu1 %v710_v43, %s5022_s29 }
 0x232   : > { %756 = vrot.lane.b32.xlu1 %v5257_v41, %s5021_s22 }
 0x236   : > { %759 = vrot.lane.b32.xlu1 %v5257_v41, %s5022_s29 }
 0x23a   : > { %762 = vrot.lane.b32.xlu1 %v5257_v41, %s5020_s15 }
 0x29c   : > { %v913_v56 = vpop.permute.xlu0 %912  ;;  %v907_v57 = vpop.permute.xlu1 %906 }
 0x29d   : > { %v931_v60 = vcombine.low %v907_v57, %v913_v56  ;;  %v932_v61 = vcombine.high %v907_v57, %v913_v56 }
 0x29f   : > { %v939_v3 = vrot.slane %v931_v60, %v5273_v59  ;;  %v946_v4 = vrot.slane %v932_v61, %v5273_v59 }
 0x2a0   : > { %v910_v62 = vpop.permute.xlu1 %909 }
 0x2a1   : > { %v915_v63 = vcombine.low %v710_v43, %v910_v62  ;;  %v916_v1 = vcombine.high %v710_v43, %v910_v62 }
 0x2a3   : > { %v923_v5 = vrot.slane %v915_v63, %v5273_v59  ;;  %v930_v6 = vrot.slane %v916_v1, %v5273_v59 }
 0x2a4   : > { %v757_v7 = vpop.permute.xlu1 %756 }
 0x2a5   : > { %v947_v8 = vcombine.low %v923_v5, %v939_v3  ;;  %v948_v9 = vcombine.high %v923_v5, %v939_v3  ;;  %v963_v10 = vcombine.low %v930_v6, %v946_v4  ;;  %v964_v11 = vcombine.high %v930_v6, %v946_v4 }
 0x2a7   : > { %v955_v12 = vrot.slane %v947_v8, %v5276_v2  ;;  %v962_v13 = vrot.slane %v948_v9, %v5276_v2  ;;  %v971_v14 = vrot.slane %v963_v10, %v5276_v2  ;;  %v978_v15 = vrot.slane %v964_v11, %v5276_v2 }
 0x2a8   : > { %v760_v16 = vpop.permute.xlu1 %759 }
 0x2a9   : > { %v983_v17 = vcombine.low %v955_v12, %v962_v13  ;;  %v4165_v18 = vcombine.high %v955_v12, %v962_v13  ;;  %v999_v19 = vcombine.low %v971_v14, %v978_v15  ;;  %v4166_v20 = vcombine.high %v971_v14, %v978_v15 }
 0x2aa   : > { %v765_v21 = vcombine.low %v5257_v41, %v760_v16  ;;  %v766_v22 = vcombine.high %v5257_v41, %v760_v16 }
 0x2ab   : > { %v990_v23 = vrot.slane %v983_v17, %v5273_v59  ;;  %v998_v24 = vrot.slane %v4165_v18, %v5273_v59  ;;  %v1006_v26 = vrot.slane %v999_v19, %v5273_v59  ;;  %v1014_v27 = vrot.slane %v4166_v20, %v5273_v59 }
 0x2ac   : > { %v763_v28 = vpop.permute.xlu1 %762  ;;  %v773_v33 = vrot.slane %v765_v21, %v5273_v59  ;;  %v780_v34 = vrot.slane %v766_v22, %v5273_v59 }
 0x2ad   : > { %v781_v29 = vcombine.low %v757_v7, %v763_v28  ;;  %v782_v30 = vcombine.high %v757_v7, %v763_v28  ;;  %v1015_v31 = vcombine.low %v990_v23, %v998_v24  ;;  %v1031_v32 = vcombine.low %v1006_v26, %v1014_v27 }
 0x2ae   : > { %v1016_v61 = vcombine.high %v990_v23, %v998_v24  ;;  %v1032_v3 = vcombine.high %v1006_v26, %v1014_v27 }
 0x2af   : > { %v789_v35 = vrot.slane %v781_v29, %v5273_v59  ;;  %v796_v36 = vrot.slane %v782_v30, %v5273_v59  ;;  %v1023_v37 = vrot.slane %v1015_v31, %v5276_v2  ;;  %v1039_v38 = vrot.slane %v1031_v32, %v5276_v2  ;;  %v482_v29 = vld [vmem:[%s479_s24] sm:$0xff] }
 0x2b0   : > { %v1030_v8 = vrot.slane %v1016_v61, %v5276_v2  ;;  %v1046_v9 = vrot.slane %v1032_v3, %v5276_v2  ;;  %vm483_vm2 = vcmp.eq.f32.partialorder %v482_v29, 0.0 }
 0x2b1   : > { %v797_v39 = vcombine.low %v773_v33, %v789_v35  ;;  %v798_v40 = vcombine.high %v773_v33, %v789_v35  ;;  %v813_v41 = vcombine.low %v780_v34, %v796_v36  ;;  %v814_v43 = vcombine.high %v780_v34, %v796_v36 }
 0x2b2   : > { %v1047_v44 = vcombine.low %v1023_v37, %v1039_v38  ;;  %v1048_v1 = vcombine.high %v1023_v37, %v1039_v38  ;;  %v1049_v12 = vcombine.low %v1030_v8, %v1046_v9  ;;  %v1050_v21 = vcombine.high %v1030_v8, %v1046_v9 }
 0x2b3   : > { %v805_v45 = vrot.slane %v797_v39, %v5276_v2  ;;  %v812_v46 = vrot.slane %v798_v40, %v5276_v2  ;;  %v821_v47 = vrot.slane %v813_v41, %v5276_v2  ;;  %v828_v48 = vrot.slane %v814_v43, %v5276_v2 }
 0x2b4   : > { %v1051_v49 = vpack.c.bf16 %v1047_v44, %v1047_v44  ;;  %v1052_v7 = vpack.c.bf16 %v1048_v1, %v1048_v1  ;;  %v1053_v16 = vpack.c.bf16 %v1049_v12, %v1049_v12  ;;  %v1054_v23 = vpack.c.bf16 %v1050_v21, %v1050_v21 }
 0x2b5   : > { %v833_v50 = vcombine.low %v805_v45, %v812_v46  ;;  %v4163_v51 = vcombine.high %v805_v45, %v812_v46  ;;  %v849_v52 = vcombine.low %v821_v47, %v828_v48  ;;  %v4164_v53 = vcombine.high %v821_v47, %v828_v48 }
 0x2b6   : > { %v1210_v54 = vsel %vm1205_vm1, %v1051_v49, 0  ;;  %v1256_v11 = vsel %vm1205_vm1, %v1052_v7, 0  ;;  %v1302_v20 = vsel %vm1205_vm1, %v1053_v16, 0  ;;  %v1348_v26 = vsel %vm1205_vm1, %v1054_v23, 0 }
 0x2b7   : > { %v840_v56 = vrot.slane %v833_v50, %v5273_v59  ;;  %v848_v57 = vrot.slane %v4163_v51, %v5273_v59  ;;  %v856_v58 = vrot.slane %v849_v52, %v5273_v59  ;;  %v864_v60 = vrot.slane %v4164_v53, %v5273_v59  ;;  %4548 = vmatpush3.bf16.xpose.msra.mxu1 %v1210_v54 }
 0x2b8   : > { %4553 = vmatprep.subr.bf16.mxu1 %v5017_v0  ;;  %v5338_v30 = vsel %vm483_vm2, -1e+09, %v5017_v0 }
 0x2b9   : > { %v865_v62 = vcombine.low %v840_v56, %v848_v57  ;;  %v881_v63 = vcombine.low %v856_v58, %v864_v60  ;;  %v866_v13 = vcombine.high %v840_v56, %v848_v57  ;;  %v882_v14 = vcombine.high %v856_v58, %v864_v60 }
 0x2bb   : > { %v873_v4 = vrot.slane %v865_v62, %v5276_v2  ;;  %v889_v5 = vrot.slane %v881_v63, %v5276_v2  ;;  %v880_v18 = vrot.slane %v866_v13, %v5276_v2  ;;  %v896_v19 = vrot.slane %v882_v14, %v5276_v2 }
 0x2bd   : > { %v897_v6 = vcombine.low %v873_v4, %v889_v5  ;;  %v898_v15 = vcombine.high %v873_v4, %v889_v5  ;;  %v899_v22 = vcombine.low %v880_v18, %v896_v19  ;;  %v900_v27 = vcombine.high %v880_v18, %v896_v19 }
 0x2bf   : > { %v901_v10 = vpack.c.bf16 %v897_v6, %v897_v6  ;;  %v902_v17 = vpack.c.bf16 %v898_v15, %v898_v15  ;;  %v903_v24 = vpack.c.bf16 %v899_v22, %v899_v22  ;;  %v904_v28 = vpack.c.bf16 %v900_v27, %v900_v27 }
 0x2c1   : > { %4550 = vmatmul.mubr.msk.bf16.vlgmr.msra.gmra.mrb[4].mxu1 %vm1205_vm1, %v901_v10 }
 0x2c2   : > { %4554 = vmatpush3.bf16.xpose.msra.mxu1 %v1256_v11  ;;  %4555 = vmatprep.mubr.msk.bf16.mxu1 %vm5019_vm0, %v5017_v0 }
 0x2c3   : > { %4559 = vmatprep.subr.bf16.mxu1 %v5017_v0 }
 0x2c9   : > { %4556 = vmatmul.mubr.msk.bf16.vlgmr.msra.gmra.mrb[8].mxu1 %vm1205_vm1, %v902_v17 }
 0x2ca   : > { %4560 = vmatpush3.bf16.xpose.msra.mxu1 %v1302_v20  ;;  %4561 = vmatprep.mubr.msk.bf16.mxu1 %vm5019_vm0, %v5017_v0 }
 0x2cb   : > { %4565 = vmatprep.subr.bf16.mxu1 %v5017_v0 }
 0x2d1   : > { %4562 = vmatmul.mubr.msk.bf16.vlgmr.msra.gmra.mrb[12].mxu1 %vm1205_vm1, %v903_v24 }
 0x2d2   : > { %4566 = vmatpush3.bf16.xpose.msra.mxu1 %v1348_v26  ;;  %4567 = vmatprep.mubr.msk.bf16.mxu1 %vm5019_vm0, %v5017_v0 }
 0x2d3   : > { %4577 = vmatprep.subr.bf16.mxu1 %v5017_v0 }
 0x2d9   : > { %4568 = vmatmul.mubr.msk.bf16.vlgmr.msra.gmra.mrb[16].mxu1 %vm1205_vm1, %v904_v28 }
 0x2da   : > { %4579 = vmatprep.mubr.msk.bf16.mxu1 %vm5019_vm0, %v5017_v0 }
 0x394   : > { %v1246_v31 = vpop.f32.mrb[4].mxu1 }
 0x395   : > { %v1390_v32 = vmul.f32 0.17677669, %v1246_v31  ;;  %v4551_v33 = vpop.f32.mrb[5].mxu1 }
 0x396   : > { %v1249_v34 = vpop.f32.mrb[6].mxu1 }
 0x397   : > { %v4552_v35 = vpop.f32.mrb[7].mxu1  ;;  %v1394_v36 = vadd.f32 %v1390_v32, %v5338_v30 }
 0x399   : > { %v1399_v37 = vsel %vm1398_vm3, %v1394_v36, -inf }
 0x39a   : > { %1400 = vmax.xlane.f32.xlu1 %v1399_v37 }
 0x39c   : > { %v1292_v38 = vpop.f32.mrb[8].mxu1 }
 0x39d   : > { %v1391_v39 = vmul.f32 0.17677669, %v1292_v38  ;;  %v4557_v40 = vpop.f32.mrb[9].mxu1 }
 0x39e   : > { %v1295_v41 = vpop.f32.mrb[10].mxu1 }
 0x39f   : > { %v4558_v43 = vpop.f32.mrb[11].mxu1  ;;  %v1395_v44 = vadd.f32 %v1391_v39, %v5338_v30 }
 0x3a1   : > { %v1402_v45 = vsel %vm1398_vm3, %v1395_v44, -inf }
 0x3a2   : > { %1403 = vmax.xlane.f32.xlu0 %v1402_v45 }
 0x3a4   : > { %v1338_v46 = vpop.f32.mrb[12].mxu1 }
 0x3a5   : > { %v1392_v47 = vmul.f32 0.17677669, %v1338_v46  ;;  %v4563_v48 = vpop.f32.mrb[13].mxu1 }
 0x3a6   : > { %v1341_v49 = vpop.f32.mrb[14].mxu1 }
 0x3a7   : > { %v4564_v50 = vpop.f32.mrb[15].mxu1  ;;  %v1396_v51 = vadd.f32 %v1392_v47, %v5338_v30 }
 0x3a9   : > { %v1405_v52 = vsel %vm1398_vm3, %v1396_v51, -inf }
 0x3aa   : > { %1406 = vmax.xlane.f32.xlu1 %v1405_v52 }
 0x3ac   : > { %v1384_v53 = vpop.f32.mrb[16].mxu1 }
 0x3ad   : > { %v1393_v54 = vmul.f32 0.17677669, %v1384_v53  ;;  %v4569_v56 = vpop.f32.mrb[17].mxu1 }
 0x3ae   : > { %v1387_v57 = vpop.f32.mrb[18].mxu1 }
 0x3af   : > { %v4570_v58 = vpop.f32.mrb[19].mxu1  ;;  %v1397_v60 = vadd.f32 %v1393_v54, %v5338_v30 }
 0x3b1   : > { %v1408_v61 = vsel %vm1398_vm3, %v1397_v60, -inf }
 0x3b2   : > { %1409 = vmax.xlane.f32.xlu1 %v1408_v61 }
 0x3c3   : > { %1059 = vrot.lane.b32.xlu1 %v5259_v42, %s5022_s29 }
 0x427   : > { %v1401_v62 = vpop.xlane.xlu1 %1400 }
 0x428   : > { %v1411_v63 = vsub.f32 %v1394_v36, %v1401_v62 }
 0x42a   : > { %v1415_v1 = vmul.f32 1.442695, %v1411_v63 }
 0x42c   : > { %4912 = vpow2.f32 %v1415_v1 }
 0x42f   : > { %v1404_v3 = vpop.xlane.xlu0 %1403 }
 0x430   : > { %v1412_v4 = vsub.f32 %v1395_v44, %v1404_v3 }
 0x432   : > { %v1417_v5 = vmul.f32 1.442695, %v1412_v4 }
 0x434   : > { %4914 = vpow2.f32 %v1417_v5 }
 0x436   : > { %v5350_v6 = vpop.eup %4912 }
 0x437   : > { %v1423_v7 = vsel %vm1398_vm3, %v5350_v6, 0.0  ;;  %v1407_v10 = vpop.xlane.xlu1 %1406 }
 0x438   : > { %1424 = vadd.xlane.f32.xlu0 %v1423_v7  ;;  %v1413_v11 = vsub.f32 %v1396_v51, %v1407_v10 }
 0x43a   : > { %v1419_v12 = vmul.f32 1.442695, %v1413_v11 }
 0x43c   : > { %4916 = vpow2.f32 %v1419_v12 }
 0x43e   : > { %v5354_v8 = vpop.eup %4914 }
 0x43f   : > { %v1426_v9 = vsel %vm1398_vm3, %v5354_v8, 0.0  ;;  %v1410_v13 = vpop.xlane.xlu1 %1409 }
 0x440   : > { %1427 = vadd.xlane.f32.xlu1 %v1426_v9  ;;  %v1414_v14 = vsub.f32 %v1397_v60, %v1410_v13 }
 0x442   : > { %v1421_v15 = vmul.f32 1.442695, %v1414_v14 }
 0x443   : > { %v1060_v20 = vpop.permute.xlu1 %1059 }
 0x444   : > { %4918 = vpow2.f32 %v1421_v15  ;;  %v1065_v23 = vcombine.low %v5259_v42, %v1060_v20  ;;  %v1066_v24 = vcombine.high %v5259_v42, %v1060_v20 }
 0x446   : > { %v5362_v16 = vpop.eup %4916  ;;  %v1073_v31 = vrot.slane %v1065_v23, %v5273_v59  ;;  %v1080_v32 = vrot.slane %v1066_v24, %v5273_v59 }
 0x447   : > { %v1429_v17 = vsel %vm1398_vm3, %v5362_v16, 0.0 }
 0x44e   : > { %1056 = vrot.lane.b32.xlu0 %v5259_v42, %s5021_s22  ;;  %v5366_v18 = vpop.eup %4918 }
 0x44f   : > { %v1432_v19 = vsel %vm1398_vm3, %v5366_v18, 0.0 }
 0x451   : > { %1062 = vrot.lane.b32.xlu1 %v5259_v42, %s5020_s15 }
 0x46d   : > { %1430 = vadd.xlane.f32.xlu0 %v1429_v17 }
 0x475   : > { %1433 = vadd.xlane.f32.xlu1 %v1432_v19 }
 0x4c5   : > { %v1425_v21 = vpop.xlane.xlu0 %1424 }
 0x4c6   : > { %4920 = vrcp.f32 %v1425_v21 }
 0x4c9   : > { %v1057_v26 = vpop.permute.xlu0 %1056 }
 0x4cd   : > { %v1428_v22 = vpop.xlane.xlu1 %1427 }
 0x4ce   : > { %4922 = vrcp.f32 %v1428_v22 }
 0x4d0   : > { %v4921_v56 = vpop.eup %4920 }
 0x4d1   : > { %v1063_v27 = vpop.permute.xlu1 %1062  ;;  %v1439_v5 = vmul.f32 %v4921_v56, %v5350_v6 }
 0x4d2   : > { %v1081_v28 = vcombine.low %v1057_v26, %v1063_v27  ;;  %v1082_v29 = vcombine.high %v1057_v26, %v1063_v27 }
 0x4d3   : > { %v1443_v15 = vpack.c.bf16 %v1439_v5, %v1439_v5 }
 0x4d4   : > { %v1089_v33 = vrot.slane %v1081_v28, %v5273_v59  ;;  %v1096_v34 = vrot.slane %v1082_v29, %v5273_v59  ;;  %v4782_v28 = vld [vmem:[%s6039_s3] sm:$0xff]   ;;  %v4785_v29 = vld [vmem:[%s6039_s3 + $0x18] sm:$0xff]  }
 0x4d6   : > { %v1097_v35 = vcombine.low %v1073_v31, %v1089_v33  ;;  %v1098_v36 = vcombine.high %v1073_v31, %v1089_v33  ;;  %v1113_v37 = vcombine.low %v1080_v32, %v1096_v34  ;;  %v1114_v38 = vcombine.high %v1080_v32, %v1096_v34  ;;  %v4786_v31 = vld [vmem:[%s6039_s3 + $0x20] sm:$0xff]   ;;  %v4787_v32 = vld [vmem:[%s6039_s3 + $0x28] sm:$0xff]  }
 0x4d8   : > { %v1105_v42 = vrot.slane %v1097_v35, %v5276_v2  ;;  %v1112_v39 = vrot.slane %v1098_v36, %v5276_v2  ;;  %v1121_v40 = vrot.slane %v1113_v37, %v5276_v2  ;;  %v1128_v41 = vrot.slane %v1114_v38, %v5276_v2  ;;  %v4923_v62 = vpop.eup %4922 }
 0x4d9   : > { %v1440_v7 = vmul.f32 %v4923_v62, %v5354_v8 }
 0x4da   : > { %v1133_v43 = vcombine.low %v1105_v42, %v1112_v39  ;;  %v4167_v44 = vcombine.high %v1105_v42, %v1112_v39  ;;  %v1149_v45 = vcombine.low %v1121_v40, %v1128_v41  ;;  %v4168_v46 = vcombine.high %v1121_v40, %v1128_v41 }
 0x4db   : > { %v1444_v17 = vpack.c.bf16 %v1440_v7, %v1440_v7 }
 0x4dc   : > { %v1140_v47 = vrot.slane %v1133_v43, %v5273_v59  ;;  %v1148_v48 = vrot.slane %v4167_v44, %v5273_v59  ;;  %v1156_v49 = vrot.slane %v1149_v45, %v5273_v59  ;;  %v1164_v50 = vrot.slane %v4168_v46, %v5273_v59 }
 0x4de   : > { %v1165_v51 = vcombine.low %v1140_v47, %v1148_v48  ;;  %v1181_v52 = vcombine.low %v1156_v49, %v1164_v50  ;;  %v1166_v53 = vcombine.high %v1140_v47, %v1148_v48  ;;  %v1182_v54 = vcombine.high %v1156_v49, %v1164_v50 }
 0x4e0   : > { %v1173_v57 = vrot.slane %v1165_v51, %v5276_v2  ;;  %v1189_v58 = vrot.slane %v1181_v52, %v5276_v2  ;;  %v1180_v60 = vrot.slane %v1166_v53, %v5276_v2  ;;  %v1196_v61 = vrot.slane %v1182_v54, %v5276_v2 }
 0x4e2   : > { %v1197_v63 = vcombine.low %v1173_v57, %v1189_v58  ;;  %v1198_v1 = vcombine.high %v1173_v57, %v1189_v58  ;;  %v1199_v3 = vcombine.low %v1180_v60, %v1196_v61  ;;  %v1200_v4 = vcombine.high %v1180_v60, %v1196_v61 }
 0x4e4   : > { %v1201_v9 = vpack.c.bf16 %v1197_v63, %v1197_v63  ;;  %v1202_v10 = vpack.c.bf16 %v1198_v1, %v1198_v1  ;;  %v1203_v13 = vpack.c.bf16 %v1199_v3, %v1199_v3  ;;  %v1204_v14 = vpack.c.bf16 %v1200_v4, %v1200_v4  ;;  %v4788_v63 = vld [vmem:[%s6039_s3 + $0x30] sm:$0xff]  }
 0x4e6   : > { %v1452_v11 = vsel %vm1450_vm4, %v1201_v9, 0  ;;  %v1498_v12 = vsel %vm1450_vm4, %v1202_v10, 0  ;;  %v1544_v6 = vsel %vm1450_vm4, %v1203_v13, 0  ;;  %v1590_v8 = vsel %vm1450_vm4, %v1204_v14, 0 }
 0x4e7   : > { %4572 = vmatpush3.bf16.msra.mxu0 %v1452_v11  ;;  %4578 = vmatpush3.bf16.msra.mxu1 %v1498_v12  ;;  %v4789_v12 = vld [vmem:[%s6039_s3 + $0x38] sm:$0xff]  }
 0x4e8   : > { %4583 = vmatprep.subr.bf16.mxu0 %v5017_v0  ;;  %4589 = vmatprep.subr.bf16.mxu1 %v5017_v0 }
 0x4ea   : > { %4574 = vmatmul.mubr.msk.bf16.vlgmr.msra.gmra.mrb[4].mxu0 %vm1398_vm3, %v1443_v15  ;;  %4580 = vmatmul.mubr.msk.bf16.vlgmr.msra.gmra.mrb[20].mxu1 %vm1398_vm3, %v1444_v17 }
 0x4eb   : > { %4584 = vmatpush3.bf16.msra.mxu0 %v1544_v6  ;;  %4590 = vmatpush3.bf16.msra.mxu1 %v1590_v8 }
 0x4ec   : > { %4585 = vmatprep.mubr.msk.bf16.mxu0 %vm5019_vm0, %v5017_v0  ;;  %4591 = vmatprep.mubr.msk.bf16.mxu1 %vm5019_vm0, %v5017_v0 }
 0x4ed   : > { %4595 = vmatprep.subr.bf16.mxu0 %v5017_v0 }
 0x4fa   : > { %v1431_v19 = vpop.xlane.xlu0 %1430 }
 0x4fb   : > { %4924 = vrcp.f32 %v1431_v19 }
 0x502   : > { %v1434_v20 = vpop.xlane.xlu1 %1433 }
 0x503   : > { %4926 = vrcp.f32 %v1434_v20 }
 0x505   : > { %v4925_v21 = vpop.eup %4924 }
 0x506   : > { %v1441_v22 = vmul.f32 %v4925_v21, %v5362_v16  ;;  %v4783_v16 = vld [vmem:[%s6039_s3 + $0x8] sm:$0xff]  }
 0x508   : > { %v1445_v23 = vpack.c.bf16 %v1441_v22, %v1441_v22 }
 0x50a   : > { %4586 = vmatmul.mubr.msk.bf16.vlgmr.msra.gmra.mrb[8].mxu0 %vm1398_vm3, %v1445_v23 }
 0x50b   : > { %4611 = vmatprep.mubr.msk.bf16.mxu0 %vm5019_vm0, %v5017_v0  ;;  %4596 = vmatpush3.bf16.msra.mxu0 %v4782_v28 }
 0x50c   : > { %4597 = vmatprep.subr.bf16.mxu0 %v5017_v0 }
 0x50d   : > { %v4927_v24 = vpop.eup %4926 }
 0x50e   : > { %v1442_v26 = vmul.f32 %v4927_v24, %v5366_v18  ;;  %v4784_v18 = vld [vmem:[%s6039_s3 + $0x10] sm:$0xff]  }
 0x50f   : > { %4598 = vmatpush3.bf16.msra.mxu0 %v4783_v16 }
 0x510   : > { %v1446_v27 = vpack.c.bf16 %v1442_v26, %v1442_v26  ;;  %4599 = vmatprep.subr.bf16.mxu0 %v5017_v0 }
 0x512   : > { %4592 = vmatmul.mubr.msk.bf16.vlgmr.msra.gmra.mrb[24].mxu1 %vm1398_vm3, %v1446_v27 }
 0x513   : > { %2059 = vmatprep.mubr.bf16.mxu1 %v5018_v25  ;;  %4600 = vmatpush3.bf16.msra.mxu0 %v4784_v18 }
 0x514   : > { %4601 = vmatprep.subr.bf16.mxu0 %v5017_v0 }
 0x517   : > { %4602 = vmatpush3.bf16.msra.mxu0 %v4785_v29 }
 0x518   : > { %4603 = vmatprep.subr.bf16.mxu0 %v5017_v0 }
 0x51b   : > { %4604 = vmatpush3.bf16.msra.mxu0 %v4786_v31 }
 0x51c   : > { %4605 = vmatprep.subr.bf16.mxu0 %v5017_v0 }
 0x51f   : > { %4606 = vmatpush3.bf16.msra.mxu0 %v4787_v32 }
 0x520   : > { %4607 = vmatprep.subr.bf16.mxu0 %v5017_v0 }
 0x523   : > { %4608 = vmatpush3.bf16.msra.mxu0 %v4788_v63  ;;  %v4811_v63 = vld [vmem:[%s6042_s6 + $0x70] ss:$8 sps:$4 sm:$0xff]  }
 0x524   : > { %4609 = vmatprep.subr.bf16.mxu0 %v5017_v0 }
 0x527   : > { %4610 = vmatpush3.bf16.msra.mxu0 %v4789_v12  ;;  %v4822_v12 = vld [vmem:[%s6044_s8 + $0x60] sm:$0xff]  }
 0x5bd   : > { %v1488_v33 = vpop.f32.mrb[4].mxu0  ;;  %v1534_v34 = vpop.f32.mrb[20].mxu1 }
 0x5be   : > { %v4575_v35 = vpop.f32.mrb[5].mxu0  ;;  %v4581_v36 = vpop.f32.mrb[21].mxu1 }
 0x5bf   : > { %v1491_v37 = vpop.f32.mrb[6].mxu0  ;;  %v1537_v38 = vpop.f32.mrb[22].mxu1 }
 0x5c0   : > { %v4576_v42 = vpop.f32.mrb[7].mxu0  ;;  %v4582_v39 = vpop.f32.mrb[23].mxu1  ;;  %v4952_v37 = vld [vmem:[%s5160_s18] sm:$0xff] }
 0x5dd   : > { %v1580_v40 = vpop.f32.mrb[8].mxu0 }
 0x5de   : > { %v1632_v41 = vcombine.low %v1488_v33, %v1580_v40  ;;  %v1633_v43 = vcombine.high %v1488_v33, %v1580_v40  ;;  %v4587_v44 = vpop.f32.mrb[9].mxu0 }
 0x5df   : > { %v1583_v45 = vpop.f32.mrb[10].mxu0  ;;  %v4795_v44 = vld [vmem:[%s6042_s6 + $0x14] ss:$8 sps:$4 sm:$0xff]  }
 0x5e0   : > { %v4588_v46 = vpop.f32.mrb[11].mxu0  ;;  %v1640_v52 = vrot.slane %v1632_v41, %v5273_v59  ;;  %v1647_v53 = vrot.slane %v1633_v43, %v5273_v59  ;;  %v4790_v41 = vld [vmem:[%s6042_s6] ss:$8 sps:$4 sm:$0xff]   ;;  %v4792_v43 = vld [vmem:[%s6042_s6 + $0x4] ss:$8 sps:$4 sm:$0xff]  }
 0x5e1   : > { %2027 = vmatprep.subr.bf16.mxu1 %v4792_v43  ;;  %v4793_v45 = vld [vmem:[%s6042_s6 + $0x10] ss:$8 sps:$4 sm:$0xff]   ;;  %v4798_v46 = vld [vmem:[%s6042_s6 + $0x24] ss:$8 sps:$4 sm:$0xff]  }
 0x5e2   : > { %2028 = vmatpush1.bf16.msra.mxu1 %v4790_v41 }
 0x5e3   : > { %2029 = vmatprep.subr.bf16.mxu1 %v4795_v44 }
 0x5e5   : > { %v1626_v47 = vpop.f32.mrb[24].mxu1 }
 0x5e6   : > { %v1648_v48 = vcombine.low %v1534_v34, %v1626_v47  ;;  %v1649_v49 = vcombine.high %v1534_v34, %v1626_v47  ;;  %v4593_v50 = vpop.f32.mrb[25].mxu1  ;;  %2030 = vmatpush1.bf16.msra.mxu1 %v4793_v45  ;;  %v4796_v47 = vld [vmem:[%s6042_s6 + $0x20] ss:$8 sps:$4 sm:$0xff]  }
 0x5e7   : > { %v1629_v51 = vpop.f32.mrb[26].mxu1  ;;  %2031 = vmatprep.subr.bf16.mxu1 %v4798_v46 }
 0x5e8   : > { %v1656_v54 = vrot.slane %v1648_v48, %v5273_v59  ;;  %v1663_v56 = vrot.slane %v1649_v49, %v5273_v59  ;;  %v4594_v57 = vpop.f32.mrb[27].mxu1 }
 0x5e9   : > { %v4807_v57 = vld [vmem:[%s6042_s6 + $0x54] ss:$8 sps:$4 sm:$0xff]  }
 0x5ea   : > { %v1664_v58 = vcombine.low %v1640_v52, %v1656_v54  ;;  %v1665_v60 = vcombine.high %v1640_v52, %v1656_v54  ;;  %v1680_v61 = vcombine.low %v1647_v53, %v1663_v56  ;;  %v1681_v62 = vcombine.high %v1647_v53, %v1663_v56  ;;  %2032 = vmatpush1.bf16.msra.mxu1 %v4796_v47  ;;  %v4801_v52 = vld [vmem:[%s6042_s6 + $0x34] ss:$8 sps:$4 sm:$0xff]   ;;  %v4799_v53 = vld [vmem:[%s6042_s6 + $0x30] ss:$8 sps:$4 sm:$0xff]   ;;  %v4802_v54 = vld [vmem:[%s6042_s6 + $0x40] ss:$8 sps:$4 sm:$0xff]  }
 0x5eb   : > { %2033 = vmatprep.subr.bf16.mxu1 %v4801_v52  ;;  %v4804_v56 = vld [vmem:[%s6042_s6 + $0x44] ss:$8 sps:$4 sm:$0xff]  }
 0x5ec   : > { %v1672_v1 = vrot.slane %v1664_v58, %v5276_v2  ;;  %v1679_v3 = vrot.slane %v1665_v60, %v5276_v2  ;;  %v1688_v4 = vrot.slane %v1680_v61, %v5276_v2  ;;  %v1695_v5 = vrot.slane %v1681_v62, %v5276_v2  ;;  %v4805_v58 = vld [vmem:[%s6042_s6 + $0x50] ss:$8 sps:$4 sm:$0xff]   ;;  %v4810_v60 = vld [vmem:[%s6042_s6 + $0x64] ss:$8 sps:$4 sm:$0xff]   ;;  %v4808_v61 = vld [vmem:[%s6042_s6 + $0x60] ss:$8 sps:$4 sm:$0xff]  }
 0x5ed   : > { %v4813_v62 = vld [vmem:[%s6042_s6 + $0x74] ss:$8 sps:$4 sm:$0xff]  }
 0x5ee   : > { %v1700_v7 = vcombine.low %v1672_v1, %v1679_v3  ;;  %v4177_v9 = vcombine.high %v1672_v1, %v1679_v3  ;;  %v1716_v10 = vcombine.low %v1688_v4, %v1695_v5  ;;  %v4178_v11 = vcombine.high %v1688_v4, %v1695_v5  ;;  %2034 = vmatpush1.bf16.msra.mxu1 %v4799_v53  ;;  %v4814_v1 = vld [vmem:[%s6044_s8 + $0x40] sm:$0xff]   ;;  %v4816_v4 = vld [vmem:[%s6044_s8 + $0x48] sm:$0xff]  }
 0x5ef   : > { %2035 = vmatprep.subr.bf16.mxu1 %v4804_v56  ;;  %v4815_v3 = vld [vmem:[%s6044_s8] sm:$0xff]   ;;  %4449 = vmatprep.subr.bf16.mxu0 %v4814_v1  ;;  %v4817_v5 = vld [vmem:[%s6044_s8 + $0x8] sm:$0xff]  }
 0x5f0   : > { %v1707_v13 = vrot.slane %v1700_v7, %v5273_v59  ;;  %v1715_v14 = vrot.slane %v4177_v9, %v5273_v59  ;;  %v1723_v15 = vrot.slane %v1716_v10, %v5273_v59  ;;  %v1731_v17 = vrot.slane %v4178_v11, %v5273_v59  ;;  %v4818_v7 = vld [vmem:[%s6044_s8 + $0x50] sm:$0xff]   ;;  %v4820_v10 = vld [vmem:[%s6044_s8 + $0x58] sm:$0xff]  }
 0x5f1   : > { %v4819_v9 = vld [vmem:[%s6044_s8 + $0x10] sm:$0xff]   ;;  %v4821_v11 = vld [vmem:[%s6044_s8 + $0x18] sm:$0xff]  }
 0x5f2   : > { %v1733_v6 = vcombine.high %v1707_v13, %v1715_v14  ;;  %v1749_v8 = vcombine.high %v1723_v15, %v1731_v17  ;;  %v1732_v19 = vcombine.low %v1707_v13, %v1715_v14  ;;  %v1748_v20 = vcombine.low %v1723_v15, %v1731_v17  ;;  %2036 = vmatpush1.bf16.msra.mxu1 %v4802_v54  ;;  %v4823_v13 = vld [vmem:[%s6044_s8 + $0x20] sm:$0xff]   ;;  %v4824_v14 = vld [vmem:[%s6044_s8 + $0x68] sm:$0xff]  }
 0x5f3   : > { %2037 = vmatprep.subr.bf16.mxu1 %v4807_v57  ;;  %v4825_v15 = vld [vmem:[%s6044_s8 + $0x28] sm:$0xff]   ;;  %v4832_v56 = vld [vmem:[%s6038_s2 + $0xc4] ss:$12 sps:$4 sm:$0xff]  }
 0x5f4   : > { %v1747_v21 = vrot.slane %v1733_v6, %v5276_v2  ;;  %v1763_v22 = vrot.slane %v1749_v8, %v5276_v2  ;;  %v1740_v23 = vrot.slane %v1732_v19, %v5276_v2  ;;  %v1756_v24 = vrot.slane %v1748_v20, %v5276_v2  ;;  %v4187_v19 = vld [vmem:[%s6046_s10] ss:$0 sm:$0xff]  ;;  %v4833_v57 = vld [vmem:[%s6038_s2 + $0xc8] ss:$12 sps:$4 sm:$0xff]  }
 0x5f5   : > { %v4830_v54 = vld [vmem:[%s6038_s2 + $0xc0] ss:$12 sps:$4 sm:$0xff]  }
 0x5f6   : > { %v1766_v26 = vcombine.low %v1747_v21, %v1763_v22  ;;  %v1765_v27 = vcombine.high %v1740_v23, %v1756_v24  ;;  %v1767_v28 = vcombine.high %v1747_v21, %v1763_v22  ;;  %v1764_v16 = vcombine.low %v1740_v23, %v1756_v24  ;;  %2038 = vmatpush1.bf16.msra.mxu1 %v4805_v58  ;;  %v4188_v22 = vld [vmem:[%s6047_s11] ss:$0 sm:$0xff] }
 0x5f7   : > { %2039 = vmatprep.subr.bf16.mxu1 %v4810_v60  ;;  %v4837_v58 = vld [vmem:[%s6038_s2 + $0xe0] ss:$12 sps:$4 sm:$0xff]   ;;  %v4834_v60 = vld [vmem:[%s6038_s2 + $0xd8] ss:$12 sps:$4 sm:$0xff]  }
 0x5f8   : > { %1773 = vrot.lane.b32.xlu1 %v1766_v26, %s5022_s29  ;;  %1769 = vrot.lane.b32.xlu0 %v1765_v27, %s5020_s15  ;;  %v4826_v27 = vld [vmem:[%s6044_s8 + $0x70] sm:$0xff]  }
 0x5fa   : > { %2040 = vmatpush1.bf16.msra.mxu1 %v4808_v61  ;;  %v4840_v61 = vld [vmem:[%s6038_s2 + $0xf4] ss:$12 sps:$4 sm:$0xff]  }
 0x5fb   : > { %2041 = vmatprep.subr.bf16.mxu1 %v4813_v62  ;;  %v4841_v62 = vld [vmem:[%s6038_s2 + $0xf8] ss:$12 sps:$4 sm:$0xff]  }
 0x5fc   : > { %1777 = vrot.lane.b32.xlu0 %v1767_v28, %s5021_s22  ;;  %v4827_v28 = vld [vmem:[%s6044_s8 + $0x30] sm:$0xff]  }
 0x5fe   : > { %2042 = vmatpush1.bf16.msra.mxu1 %v4811_v63  ;;  %v4838_v63 = vld [vmem:[%s6038_s2 + $0xf0] ss:$12 sps:$4 sm:$0xff]  }
 0x5ff   : > { %2440 = vmatprep.subr.bf16.mxu1 %v4832_v56 }
 0x66a   : > { %v1770_v18 = vpop.permute.xlu0 %1769  ;;  %v1774_v29 = vpop.permute.xlu1 %1773 }
 0x66b   : > { %v1780_v31 = vsel %vm1205_vm1, %v1764_v16, %v1770_v18  ;;  %v4828_v16 = vld [vmem:[%s6044_s8 + $0x78] sm:$0xff]  }
 0x66c   : > { %v1782_v33 = vsel %vm1781_vm5, %v1780_v31, %v1774_v29  ;;  %v4829_v18 = vld [vmem:[%s6044_s8 + $0x38] sm:$0xff]   ;;  %v1939_v29 = vsub.s32 0, %v5270_v55  ;;  %v1935_v31 = vld [vmem:[%s6043_s7] sm:$0x3] }
 0x66e   : > { %v1778_v32 = vpop.permute.xlu0 %1777 }
 0x66f   : > { %v1784_v34 = vsel %vm1783_vm6, %v1782_v33, %v1778_v32  ;;  %v1943_v32 = vsub.s32 1, %v5270_v55  ;;  %v1940_v33 = vrot.slane %v1935_v31, %v1939_v29  ;;  %v4408_v55 = vld [vmem:[%s6045_s9 + $0x1] ss:$0 sm:$0xff] }
 0x670   : > { %v1785_v35 = vpack.c.bf16 %v1784_v34, %v1784_v34 }
 0x671   : > { %v1944_v34 = vrot.slane %v1935_v31, %v1943_v32 }
 0x672   : > { %4612 = vmatmul.mubr.bf16.vlgmr.msra.gmra.mrb[12].mxu0 %v1785_v35 }
 0x673   : > { %4450 = vmatpush3.bf16.msra.mxu0 %v4815_v3 }
 0x674   : > { %4451 = vmatprep.subr.bf16.mxu0 %v4816_v4 }
 0x677   : > { %4452 = vmatpush3.bf16.msra.mxu0 %v4817_v5 }
 0x678   : > { %4453 = vmatprep.subr.bf16.mxu0 %v4818_v7  ;;  %v4844_v7 = vld [vmem:[%s6038_s2 + $0x10c] ss:$12 sps:$4 sm:$0xff]  }
 0x67b   : > { %4454 = vmatpush3.bf16.msra.mxu0 %v4819_v9  ;;  %v4842_v9 = vld [vmem:[%s6038_s2 + $0x108] ss:$12 sps:$4 sm:$0xff]  }
 0x67c   : > { %4455 = vmatprep.subr.bf16.mxu0 %v4820_v10  ;;  %v4845_v10 = vld [vmem:[%s6038_s2 + $0x110] ss:$12 sps:$4 sm:$0xff]  }
 0x67f   : > { %4456 = vmatpush3.bf16.msra.mxu0 %v4821_v11  ;;  %v4846_v11 = vld [vmem:[%s6038_s2 + $0x120] ss:$12 sps:$4 sm:$0xff]  }
 0x680   : > { %4457 = vmatprep.subr.bf16.mxu0 %v4822_v12  ;;  %v4848_v12 = vld [vmem:[%s6038_s2 + $0x124] ss:$12 sps:$4 sm:$0xff]  }
 0x683   : > { %4458 = vmatpush3.bf16.msra.mxu0 %v4823_v13  ;;  %v4849_v13 = vld [vmem:[%s6038_s2 + $0x128] ss:$12 sps:$4 sm:$0xff]  }
 0x684   : > { %4459 = vmatprep.subr.bf16.mxu0 %v4824_v14  ;;  %v4852_v14 = vld [vmem:[%s6038_s2 + $0x13c] ss:$12 sps:$4 sm:$0xff]  }
 0x687   : > { %4460 = vmatpush3.bf16.msra.mxu0 %v4825_v15  ;;  %v4850_v15 = vld [vmem:[%s6038_s2 + $0x138] ss:$12 sps:$4 sm:$0xff]  }
 0x688   : > { %4461 = vmatprep.subr.bf16.mxu0 %v4826_v27  ;;  %v4224_v27 = vld [vmem:[%s6040_s4 + $0x1] ss:$0 sm:$0xff] }
 0x68b   : > { %4462 = vmatpush3.bf16.msra.mxu0 %v4827_v28 }
 0x68c   : > { %4463 = vmatprep.subr.bf16.mxu0 %v4828_v16 }
 0x68f   : > { %4464 = vmatpush3.bf16.msra.mxu0 %v4829_v18  ;;  %v4225_v18 = vld [vmem:[%s6041_s5 + $0x1] ss:$0 sm:$0xff] }
 0x690   : > { %4615 = vmatprep.subr.bf16.mxu0 %v5017_v0 }
 0x745   : > { %v1884_v36 = vpop.f32.mrb[12].mxu0 }
 0x746   : > { %v5464_v38 = vadd.f32 %v4952_v37, %v1884_v36  ;;  %v4613_v42 = vpop.f32.mrb[13].mxu0 }
 0x747   : > { %v1887_v39 = vpop.f32.mrb[14].mxu0 }
 0x748   : > { %1893 = vadd.xlane.f32.xlu1 %v5464_v38  ;;  %v4614_v40 = vpop.f32.mrb[15].mxu0 }
 0x7d5   : > { %v1894_v48 = vpop.xlane.xlu1 %1893 }
 0x7d6   : > { %v1895_v49 = vmul.f32 0.0078125, %v1894_v48 }
 0x7d8   : > { %v1896_v50 = vsub.f32 %v5464_v38, %v1895_v49 }
 0x7da   : > { %v1897_v51 = vmul.f32 %v1896_v50, %v1896_v50  ;;  %v1909_v20 = vmul.f32 %v4187_v19, %v1896_v50  ;;  %v4857_v19 = vld [vmem:[%s6038_s2 + $0x158] ss:$12 sps:$4 sm:$0xff]  }
 0x7dc   : > { %1898 = vadd.xlane.f32.xlu0 %v1897_v51  ;;  %v4221_v51 = vld [vmem:[%s6045_s9] ss:$0 sm:$0xff] }
 0x869   : > { %v1899_v17 = vpop.xlane.xlu0 %1898 }
 0x86a   : > { %v1900_v6 = vmul.f32 0.007874016, %v1899_v17  ;;  %v4853_v17 = vld [vmem:[%s6038_s2 + $0x140] ss:$12 sps:$4 sm:$0xff]  }
 0x86c   : > { %v1901_v8 = vadd.f32 1e-12, %v1900_v6  ;;  %v4856_v6 = vld [vmem:[%s6038_s2 + $0x154] ss:$12 sps:$4 sm:$0xff]  }
 0x86e   : > { %4928 = vrsqrt.f32 %v1901_v8  ;;  %v4854_v8 = vld [vmem:[%s6038_s2 + $0x150] ss:$12 sps:$4 sm:$0xff]  }
 0x878   : > { %v4929_v21 = vpop.eup %4928 }
 0x879   : > { %v1910_v23 = vmul.f32 %v4929_v21, %v1909_v20  ;;  %v4860_v20 = vld [vmem:[%s6038_s2 + $0x16c] ss:$12 sps:$4 sm:$0xff]   ;;  %v4858_v21 = vld [vmem:[%s6038_s2 + $0x168] ss:$12 sps:$4 sm:$0xff]  }
 0x87b   : > { %v1917_v24 = vadd.f32 %v4188_v22, %v1910_v23  ;;  %v4861_v22 = vld [vmem:[%s6038_s2 + $0x170] ss:$12 sps:$4 sm:$0xff]  }
 0x87d   : > { %v1918_v26 = vpack.c.bf16 %v1917_v24, %v1917_v24 }
 0x87f   : > { %2060 = vmatmul.mubr.bf16.vlgmr.msra.gmra.mrb[28].mxu1 %v1918_v26 }
 0x880   : > { %2472 = vmatprep.mubr.bf16.mxu1 %v5018_v25  ;;  %2441 = vmatpush1.bf16.msra.mxu1 %v4830_v54 }
 0x952   : > { %v2061_v35 = vpop.f32.mrb[28].mxu1 }
 0x953   : > { %v2062_v36 = vadd.f32 %v2061_v35, %v1940_v33  ;;  %v2063_v37 = vpop.f32.mrb[29].mxu1 }
 0x954   : > { %v2064_v42 = vadd.f32 %v2063_v37, %v1944_v34  ;;  %v2065_v39 = vpop.f32.mrb[30].mxu1 }
 0x955   : > { %v2068_v40 = vmax.f32 %v2062_v36, 0.0  ;;  %v2066_v41 = vpop.f32.mrb[31].mxu1 }
 0x956   : > { %v2069_v43 = vmax.f32 %v2064_v42, 0.0 }
 0x957   : > { %v2070_v45 = vpack.c.bf16 %v2068_v40, %v2068_v40 }
 0x958   : > { %v2071_v44 = vpack.c.bf16 %v2069_v43, %v2069_v43 }
 0x95a   : > { %2232 = vmatprep.mubr.bf16.mxu0 %v2071_v44 }
 0x95b   : > { %2233 = vmatmul.mubr.bf16.vlgmr.msra.gmra.mrb[16].mxu0 %v2070_v45 }
 0x95c   : > { %4631 = vmatprep.mubr.msk.bf16.mxu0 %vm5019_vm0, %v5017_v0  ;;  %4616 = vmatpush3.bf16.msra.mxu0 %v4833_v57 }
 0x95d   : > { %4617 = vmatprep.subr.bf16.mxu0 %v5017_v0 }
 0x960   : > { %4618 = vmatpush3.bf16.msra.mxu0 %v4837_v58 }
 0x961   : > { %4619 = vmatprep.subr.bf16.mxu0 %v5017_v0 }
 0x964   : > { %4620 = vmatpush3.bf16.msra.mxu0 %v4841_v62 }
 0x965   : > { %4621 = vmatprep.subr.bf16.mxu0 %v5017_v0 }
 0x968   : > { %4622 = vmatpush3.bf16.msra.mxu0 %v4845_v10 }
 0x969   : > { %4623 = vmatprep.subr.bf16.mxu0 %v5017_v0 }
 0x96c   : > { %4624 = vmatpush3.bf16.msra.mxu0 %v4849_v13 }
 0x96d   : > { %4625 = vmatprep.subr.bf16.mxu0 %v5017_v0 }
 0x970   : > { %4626 = vmatpush3.bf16.msra.mxu0 %v4853_v17 }
 0x971   : > { %4627 = vmatprep.subr.bf16.mxu0 %v5017_v0 }
 0x974   : > { %4628 = vmatpush3.bf16.msra.mxu0 %v4857_v19 }
 0x975   : > { %4629 = vmatprep.subr.bf16.mxu0 %v5017_v0 }
 0x978   : > { %4630 = vmatpush3.bf16.msra.mxu0 %v4861_v22 }
 0x979   : > { %4659 = vmatprep.subr.bf16.mxu0 %v5017_v0 }
 0xa2e   : > { %v4465_v46 = vpop.f32.mrb[16].mxu0 }
 0xa2f   : > { %v4466_v47 = vpop.f32.mrb[17].mxu0 }
 0xa30   : > { %v4467_v48 = vadd.f32 %v4466_v47, %v4465_v46  ;;  %v4468_v49 = vpop.f32.mrb[18].mxu0 }
 0xa31   : > { %v4469_v50 = vpop.f32.mrb[19].mxu0 }
 0xa32   : > { %v2240_v52 = vadd.f32 %v4467_v48, %v5464_v38  ;;  %v4836_v38 = vld [vmem:[%s6038_s2 + $0xdc] ss:$12 sps:$4 sm:$0xff]  }
 0xa33   : > { %2442 = vmatprep.subr.bf16.mxu1 %v4836_v38 }
 0xa34   : > { %v5587_v53 = vadd.f32 %v4221_v51, %v2240_v52  ;;  %2443 = vmatpush1.bf16.msra.mxu1 %v4834_v60 }
 0xa35   : > { %2444 = vmatprep.subr.bf16.mxu1 %v4840_v61 }
 0xa36   : > { %2253 = vadd.xlane.f32.xlu0 %v5587_v53 }
 0xa38   : > { %2445 = vmatpush1.bf16.msra.mxu1 %v4838_v63 }
 0xa39   : > { %2446 = vmatprep.subr.bf16.mxu1 %v4844_v7 }
 0xa3c   : > { %2447 = vmatpush1.bf16.msra.mxu1 %v4842_v9 }
 0xa3d   : > { %2448 = vmatprep.subr.bf16.mxu1 %v4848_v12 }
 0xa40   : > { %2449 = vmatpush1.bf16.msra.mxu1 %v4846_v11 }
 0xa41   : > { %2450 = vmatprep.subr.bf16.mxu1 %v4852_v14 }
 0xa44   : > { %2451 = vmatpush1.bf16.msra.mxu1 %v4850_v15 }
 0xa45   : > { %2452 = vmatprep.subr.bf16.mxu1 %v4856_v6 }
 0xa48   : > { %2453 = vmatpush1.bf16.msra.mxu1 %v4854_v8 }
 0xa49   : > { %2454 = vmatprep.subr.bf16.mxu1 %v4860_v20 }
 0xa4c   : > { %2455 = vmatpush1.bf16.msra.mxu1 %v4858_v21 }
 0xa4d   : > { %4635 = vmatprep.subr.bf16.mxu1 %v5017_v0 }
 0xac3   : > { %v2254_v1 = vpop.xlane.xlu0 %2253 }
 0xac4   : > { %v2255_v3 = vmul.f32 0.0078125, %v2254_v1 }
 0xac6   : > { %v2256_v4 = vsub.f32 %v5587_v53, %v2255_v3 }
 0xac8   : > { %v2257_v5 = vmul.f32 %v2256_v4, %v2256_v4  ;;  %v2269_v28 = vmul.f32 %v4224_v27, %v2256_v4 }
 0xaca   : > { %2258 = vadd.xlane.f32.xlu1 %v2257_v5 }
 0xb57   : > { %v2259_v23 = vpop.xlane.xlu1 %2258 }
 0xb58   : > { %v2260_v24 = vmul.f32 0.007874016, %v2259_v23 }
 0xb5a   : > { %v2261_v26 = vadd.f32 1e-12, %v2260_v24 }
 0xb5c   : > { %4930 = vrsqrt.f32 %v2261_v26 }
 0xb66   : > { %v4931_v16 = vpop.eup %4930 }
 0xb67   : > { %v2270_v31 = vmul.f32 %v4931_v16, %v2269_v28 }
 0xb69   : > { %v2277_v33 = vadd.f32 %v4225_v18, %v2270_v31 }
 0xb6b   : > { %v2278_v34 = vpack.c.bf16 %v2277_v33, %v2277_v33 }
 0xb6d   : > { %2473 = vmatmul.mubr.bf16.vlgmr.msra.gmra.mrb[32].mxu1 %v2278_v34  ;;  %4632 = vmatmul.mubr.bf16.vlgmr.msra.gmra.mrb[20].mxu0 %v2278_v34 }
 0xb6e   : > { %4637 = vmatprep.mubr.msk.bf16.mxu1 %vm5019_vm0, %v5017_v0  ;;  %4661 = vmatprep.mubr.msk.bf16.mxu0 %vm5019_vm0, %v5017_v0 }
 0xc40   : > { %v2474_v35 = vpop.f32.mrb[32].mxu1  ;;  %v5682_v36 = vpop.f32.mrb[20].mxu0 }
 0xc41   : > { %v2476_v37 = vpop.f32.mrb[33].mxu1  ;;  %v4633_v42 = vpop.f32.mrb[21].mxu0 }
 0xc42   : > { %v2518_v39 = vpop.f32.mrb[22].mxu0  ;;  %2675 = vrot.lane.b32.xlu1 %v2476_v37, %s5022_s29  ;;  %2672 = vrot.lane.b32.xlu0 %v2476_v37, %s5021_s22  ;;  %v2478_v40 = vpop.f32.mrb[34].mxu1 }
 0xc43   : > { %v2479_v41 = vpop.f32.mrb[35].mxu1  ;;  %v4634_v43 = vpop.f32.mrb[23].mxu0 }
 0xc46   : > { %2678 = vrot.lane.b32.xlu1 %v2476_v37, %s5020_s15  ;;  %2522 = vrot.lane.b32.xlu0 %v2474_v35, %s5021_s22 }
 0xc4a   : > { %2525 = vrot.lane.b32.xlu1 %v2474_v35, %s5022_s29  ;;  %2528 = vrot.lane.b32.xlu0 %v2474_v35, %s5020_s15 }
 0xcb4   : > { %v2676_v44 = vpop.permute.xlu1 %2675  ;;  %v2673_v45 = vpop.permute.xlu0 %2672 }
 0xcb5   : > { %v2681_v46 = vcombine.low %v2476_v37, %v2676_v44  ;;  %v2682_v47 = vcombine.high %v2476_v37, %v2676_v44 }
 0xcb7   : > { %v2689_v52 = vrot.slane %v2681_v46, %v5273_v59  ;;  %v2696_v54 = vrot.slane %v2682_v47, %v5273_v59 }
 0xcb8   : > { %v2679_v48 = vpop.permute.xlu1 %2678  ;;  %v2523_v49 = vpop.permute.xlu0 %2522 }
 0xcb9   : > { %v2697_v50 = vcombine.low %v2673_v45, %v2679_v48  ;;  %v2698_v51 = vcombine.high %v2673_v45, %v2679_v48 }
 0xcbb   : > { %v2705_v56 = vrot.slane %v2697_v50, %v5273_v59  ;;  %v2712_v57 = vrot.slane %v2698_v51, %v5273_v59 }
 0xcbc   : > { %v2526_v38 = vpop.permute.xlu1 %2525  ;;  %v2529_v58 = vpop.permute.xlu0 %2528 }
 0xcbd   : > { %v2713_v60 = vcombine.low %v2689_v52, %v2705_v56  ;;  %v2714_v61 = vcombine.high %v2689_v52, %v2705_v56  ;;  %v2729_v62 = vcombine.low %v2696_v54, %v2712_v57  ;;  %v2730_v63 = vcombine.high %v2696_v54, %v2712_v57 }
 0xcbe   : > { %v2531_v1 = vcombine.low %v2474_v35, %v2526_v38  ;;  %v2532_v3 = vcombine.high %v2474_v35, %v2526_v38  ;;  %v2547_v4 = vcombine.low %v2523_v49, %v2529_v58  ;;  %v2548_v5 = vcombine.high %v2523_v49, %v2529_v58 }
 0xcbf   : > { %v2721_v7 = vrot.slane %v2713_v60, %v5276_v2  ;;  %v2728_v9 = vrot.slane %v2714_v61, %v5276_v2  ;;  %v2737_v10 = vrot.slane %v2729_v62, %v5276_v2  ;;  %v2744_v11 = vrot.slane %v2730_v63, %v5276_v2 }
 0xcc0   : > { %v2539_v12 = vrot.slane %v2531_v1, %v5273_v59  ;;  %v2546_v13 = vrot.slane %v2532_v3, %v5273_v59  ;;  %v2555_v14 = vrot.slane %v2547_v4, %v5273_v59  ;;  %v2562_v15 = vrot.slane %v2548_v5, %v5273_v59 }
 0xcc1   : > { %v2749_v17 = vcombine.low %v2721_v7, %v2728_v9  ;;  %v4284_v6 = vcombine.high %v2721_v7, %v2728_v9  ;;  %v2765_v8 = vcombine.low %v2737_v10, %v2744_v11  ;;  %v4285_v19 = vcombine.high %v2737_v10, %v2744_v11 }
 0xcc2   : > { %v2563_v20 = vcombine.low %v2539_v12, %v2555_v14  ;;  %v2564_v21 = vcombine.high %v2539_v12, %v2555_v14  ;;  %v2579_v22 = vcombine.low %v2546_v13, %v2562_v15  ;;  %v2580_v23 = vcombine.high %v2546_v13, %v2562_v15 }
 0xcc3   : > { %v2756_v24 = vrot.slane %v2749_v17, %v5273_v59  ;;  %v2764_v26 = vrot.slane %v4284_v6, %v5273_v59  ;;  %v2772_v27 = vrot.slane %v2765_v8, %v5273_v59  ;;  %v2780_v28 = vrot.slane %v4285_v19, %v5273_v59 }
 0xcc4   : > { %v2571_v16 = vrot.slane %v2563_v20, %v5276_v2  ;;  %v2578_v18 = vrot.slane %v2564_v21, %v5276_v2  ;;  %v2587_v31 = vrot.slane %v2579_v22, %v5276_v2  ;;  %v2594_v33 = vrot.slane %v2580_v23, %v5276_v2 }
 0xcc5   : > { %v2781_v34 = vcombine.low %v2756_v24, %v2764_v26  ;;  %v2797_v35 = vcombine.low %v2772_v27, %v2780_v28  ;;  %v2782_v38 = vcombine.high %v2756_v24, %v2764_v26  ;;  %v2798_v58 = vcombine.high %v2772_v27, %v2780_v28 }
 0xcc6   : > { %v2599_v37 = vcombine.low %v2571_v16, %v2578_v18  ;;  %v4282_v42 = vcombine.high %v2571_v16, %v2578_v18  ;;  %v2615_v39 = vcombine.low %v2587_v31, %v2594_v33  ;;  %v4283_v40 = vcombine.high %v2587_v31, %v2594_v33 }
 0xcc7   : > { %v2789_v41 = vrot.slane %v2781_v34, %v5276_v2  ;;  %v2805_v43 = vrot.slane %v2797_v35, %v5276_v2  ;;  %v2796_v62 = vrot.slane %v2782_v38, %v5276_v2  ;;  %v2812_v63 = vrot.slane %v2798_v58, %v5276_v2 }
 0xcc8   : > { %v2606_v44 = vrot.slane %v2599_v37, %v5273_v59  ;;  %v2614_v45 = vrot.slane %v4282_v42, %v5273_v59  ;;  %v2622_v46 = vrot.slane %v2615_v39, %v5273_v59  ;;  %v2630_v47 = vrot.slane %v4283_v40, %v5273_v59 }
 0xcc9   : > { %v2813_v48 = vcombine.low %v2789_v41, %v2805_v43  ;;  %v2814_v57 = vcombine.high %v2789_v41, %v2805_v43  ;;  %v2815_v4 = vcombine.low %v2796_v62, %v2812_v63  ;;  %v2816_v15 = vcombine.high %v2796_v62, %v2812_v63 }
 0xcca   : > { %v2631_v49 = vcombine.low %v2606_v44, %v2614_v45  ;;  %v2647_v50 = vcombine.low %v2622_v46, %v2630_v47  ;;  %v2632_v5 = vcombine.high %v2606_v44, %v2614_v45  ;;  %v2648_v7 = vcombine.high %v2622_v46, %v2630_v47 }
 0xccb   : > { %v2817_v51 = vpack.c.bf16 %v2813_v48, %v2813_v48  ;;  %v2818_v61 = vpack.c.bf16 %v2814_v57, %v2814_v57  ;;  %v2819_v10 = vpack.c.bf16 %v2815_v4, %v2815_v4  ;;  %v2820_v6 = vpack.c.bf16 %v2816_v15, %v2816_v15 }
 0xccc   : > { %v2639_v52 = vrot.slane %v2631_v49, %v5276_v2  ;;  %v2655_v54 = vrot.slane %v2647_v50, %v5276_v2  ;;  %v2646_v12 = vrot.slane %v2632_v5, %v5276_v2  ;;  %v2662_v13 = vrot.slane %v2648_v7, %v5276_v2 }
 0xccd   : > { %v2975_v56 = vsel %vm1205_vm1, %v2817_v51, 0  ;;  %v3021_v3 = vsel %vm1205_vm1, %v2818_v61, 0  ;;  %v3067_v14 = vsel %vm1205_vm1, %v2819_v10, 0  ;;  %v3113_v19 = vsel %vm1205_vm1, %v2820_v6, 0 }
 0xcce   : > { %4636 = vmatpush3.bf16.xpose.msra.mxu1 %v2975_v56  ;;  %v2663_v60 = vcombine.low %v2639_v52, %v2655_v54  ;;  %v2664_v9 = vcombine.high %v2639_v52, %v2655_v54  ;;  %v2665_v17 = vcombine.low %v2646_v12, %v2662_v13  ;;  %v2666_v20 = vcombine.high %v2646_v12, %v2662_v13 }
 0xccf   : > { %4641 = vmatprep.subr.bf16.mxu1 %v5017_v0 }
 0xcd0   : > { %v2667_v1 = vpack.c.bf16 %v2663_v60, %v2663_v60  ;;  %v2668_v11 = vpack.c.bf16 %v2664_v9, %v2664_v9  ;;  %v2669_v8 = vpack.c.bf16 %v2665_v17, %v2665_v17  ;;  %v2670_v21 = vpack.c.bf16 %v2666_v20, %v2666_v20 }
 0xcd5   : > { %4638 = vmatmul.mubr.msk.bf16.vlgmr.msra.gmra.mrb[36].mxu1 %vm1205_vm1, %v2667_v1 }
 0xcd6   : > { %4642 = vmatpush3.bf16.xpose.msra.mxu1 %v3021_v3  ;;  %4643 = vmatprep.mubr.msk.bf16.mxu1 %vm5019_vm0, %v5017_v0 }
 0xcd7   : > { %4647 = vmatprep.subr.bf16.mxu1 %v5017_v0 }
 0xcdd   : > { %4644 = vmatmul.mubr.msk.bf16.vlgmr.msra.gmra.mrb[40].mxu1 %vm1205_vm1, %v2668_v11 }
 0xcde   : > { %4648 = vmatpush3.bf16.xpose.msra.mxu1 %v3067_v14  ;;  %4649 = vmatprep.mubr.msk.bf16.mxu1 %vm5019_vm0, %v5017_v0 }
 0xcdf   : > { %4653 = vmatprep.subr.bf16.mxu1 %v5017_v0 }
 0xce5   : > { %4650 = vmatmul.mubr.msk.bf16.vlgmr.msra.gmra.mrb[44].mxu1 %vm1205_vm1, %v2669_v8 }
 0xce6   : > { %4654 = vmatpush3.bf16.xpose.msra.mxu1 %v3113_v19  ;;  %4655 = vmatprep.mubr.msk.bf16.mxu1 %vm5019_vm0, %v5017_v0 }
 0xce7   : > { %4665 = vmatprep.subr.bf16.mxu1 %v5017_v0 }
 0xced   : > { %4656 = vmatmul.mubr.msk.bf16.vlgmr.msra.gmra.mrb[48].mxu1 %vm1205_vm1, %v2670_v21 }
 0xcee   : > { %4667 = vmatprep.mubr.msk.bf16.mxu1 %vm5019_vm0, %v5017_v0 }
 0xda8   : > { %v3011_v22 = vpop.f32.mrb[36].mxu1 }
 0xda9   : > { %v3155_v23 = vmul.f32 0.17677669, %v3011_v22  ;;  %v4639_v24 = vpop.f32.mrb[37].mxu1 }
 0xdaa   : > { %v3014_v26 = vpop.f32.mrb[38].mxu1 }
 0xdab   : > { %v4640_v27 = vpop.f32.mrb[39].mxu1  ;;  %v3159_v28 = vadd.f32 %v3155_v23, %v5338_v30 }
 0xdad   : > { %v3163_v16 = vsel %vm1398_vm3, %v3159_v28, -inf }
 0xdae   : > { %3164 = vmax.xlane.f32.xlu1 %v3163_v16 }
 0xdb0   : > { %v3057_v18 = vpop.f32.mrb[40].mxu1 }
 0xdb1   : > { %v3156_v31 = vmul.f32 0.17677669, %v3057_v18  ;;  %v4645_v33 = vpop.f32.mrb[41].mxu1 }
 0xdb2   : > { %v3060_v34 = vpop.f32.mrb[42].mxu1 }
 0xdb3   : > { %v4646_v35 = vpop.f32.mrb[43].mxu1  ;;  %v3160_v37 = vadd.f32 %v3156_v31, %v5338_v30 }
 0xdb5   : > { %v3166_v42 = vsel %vm1398_vm3, %v3160_v37, -inf }
 0xdb6   : > { %3167 = vmax.xlane.f32.xlu0 %v3166_v42 }
 0xdb8   : > { %v3103_v39 = vpop.f32.mrb[44].mxu1 }
 0xdb9   : > { %v3157_v40 = vmul.f32 0.17677669, %v3103_v39  ;;  %v4651_v41 = vpop.f32.mrb[45].mxu1 }
 0xdba   : > { %v3106_v43 = vpop.f32.mrb[46].mxu1 }
 0xdbb   : > { %v4652_v44 = vpop.f32.mrb[47].mxu1  ;;  %v3161_v45 = vadd.f32 %v3157_v40, %v5338_v30 }
 0xdbd   : > { %v3169_v46 = vsel %vm1398_vm3, %v3161_v45, -inf }
 0xdbe   : > { %3170 = vmax.xlane.f32.xlu0 %v3169_v46 }
 0xdc0   : > { %v3149_v47 = vpop.f32.mrb[48].mxu1 }
 0xdc1   : > { %v3158_v48 = vmul.f32 0.17677669, %v3149_v47  ;;  %v4657_v49 = vpop.f32.mrb[49].mxu1 }
 0xdc2   : > { %v3152_v50 = vpop.f32.mrb[50].mxu1 }
 0xdc3   : > { %v4658_v51 = vpop.f32.mrb[51].mxu1  ;;  %v3162_v52 = vadd.f32 %v3158_v48, %v5338_v30 }
 0xdc5   : > { %v3172_v54 = vsel %vm1398_vm3, %v3162_v52, -inf }
 0xdc6   : > { %3173 = vmax.xlane.f32.xlu1 %v3172_v54 }
 0xdd7   : > { %2825 = vrot.lane.b32.xlu1 %v5682_v36, %s5022_s29 }
 0xe3b   : > { %v3165_v56 = vpop.xlane.xlu1 %3164 }
 0xe3c   : > { %v3175_v57 = vsub.f32 %v3159_v28, %v3165_v56 }
 0xe3e   : > { %v3179_v38 = vmul.f32 1.442695, %v3175_v57 }
 0xe40   : > { %4932 = vpow2.f32 %v3179_v38 }
 0xe43   : > { %v3168_v58 = vpop.xlane.xlu0 %3167 }
 0xe44   : > { %v3176_v60 = vsub.f32 %v3160_v37, %v3168_v58 }
 0xe46   : > { %v3181_v61 = vmul.f32 1.442695, %v3176_v60 }
 0xe48   : > { %4934 = vpow2.f32 %v3181_v61 }
 0xe4a   : > { %v5752_v62 = vpop.eup %4932 }
 0xe4b   : > { %v3187_v63 = vsel %vm1398_vm3, %v5752_v62, 0.0  ;;  %v3171_v3 = vpop.xlane.xlu0 %3170 }
 0xe4c   : > { %3188 = vadd.xlane.f32.xlu0 %v3187_v63  ;;  %v3177_v4 = vsub.f32 %v3161_v45, %v3171_v3 }
 0xe4e   : > { %v3183_v5 = vmul.f32 1.442695, %v3177_v4 }
 0xe50   : > { %4936 = vpow2.f32 %v3183_v5 }
 0xe52   : > { %v5756_v30 = vpop.eup %4934 }
 0xe53   : > { %v3190_v1 = vsel %vm1398_vm3, %v5756_v30, 0.0  ;;  %v3174_v7 = vpop.xlane.xlu1 %3173 }
 0xe54   : > { %3191 = vadd.xlane.f32.xlu1 %v3190_v1  ;;  %v3178_v9 = vsub.f32 %v3162_v52, %v3174_v7 }
 0xe56   : > { %v3185_v10 = vmul.f32 1.442695, %v3178_v9 }
 0xe57   : > { %v2826_v15 = vpop.permute.xlu1 %2825 }
 0xe58   : > { %4938 = vpow2.f32 %v3185_v10  ;;  %v2831_v8 = vcombine.low %v5682_v36, %v2826_v15  ;;  %v2832_v19 = vcombine.high %v5682_v36, %v2826_v15 }
 0xe5a   : > { %v5764_v11 = vpop.eup %4936  ;;  %v2839_v24 = vrot.slane %v2831_v8, %v5273_v59  ;;  %v2846_v26 = vrot.slane %v2832_v19, %v5273_v59 }
 0xe5b   : > { %v3193_v12 = vsel %vm1398_vm3, %v5764_v11, 0.0 }
 0xe62   : > { %2822 = vrot.lane.b32.xlu0 %v5682_v36, %s5021_s22  ;;  %v5768_v13 = vpop.eup %4938 }
 0xe63   : > { %v3196_v14 = vsel %vm1398_vm3, %v5768_v13, 0.0 }
 0xe65   : > { %2828 = vrot.lane.b32.xlu1 %v5682_v36, %s5020_s15 }
 0xe81   : > { %3194 = vadd.xlane.f32.xlu0 %v3193_v12 }
 0xe89   : > { %3197 = vadd.xlane.f32.xlu1 %v3196_v14 }
 0xed9   : > { %v3189_v17 = vpop.xlane.xlu0 %3188 }
 0xeda   : > { %4940 = vrcp.f32 %v3189_v17 }
 0xedd   : > { %v2823_v20 = vpop.permute.xlu0 %2822 }
 0xee1   : > { %v3192_v6 = vpop.xlane.xlu1 %3191 }
 0xee2   : > { %4942 = vrcp.f32 %v3192_v6 }
 0xee4   : > { %v4941_v51 = vpop.eup %4940 }
 0xee5   : > { %v2829_v21 = vpop.permute.xlu1 %2828  ;;  %v3203_v1 = vmul.f32 %v4941_v51, %v5752_v62 }
 0xee6   : > { %v2847_v22 = vcombine.low %v2823_v20, %v2829_v21  ;;  %v2848_v23 = vcombine.high %v2823_v20, %v2829_v21 }
 0xee7   : > { %v3207_v14 = vpack.c.bf16 %v3203_v1, %v3203_v1 }
 0xee8   : > { %v2855_v27 = vrot.slane %v2847_v22, %v5273_v59  ;;  %v2862_v28 = vrot.slane %v2848_v23, %v5273_v59 }
 0xeea   : > { %v2863_v16 = vcombine.low %v2839_v24, %v2855_v27  ;;  %v2864_v18 = vcombine.high %v2839_v24, %v2855_v27  ;;  %v2879_v31 = vcombine.low %v2846_v26, %v2862_v28  ;;  %v2880_v33 = vcombine.high %v2846_v26, %v2862_v28  ;;  %v4862_v24 = vld [vmem:[%s6039_s3 + $0x40] sm:$0xff]   ;;  %v4867_v27 = vld [vmem:[%s6039_s3 + $0x68] sm:$0xff]  }
 0xeeb   : > { %v4866_v26 = vld [vmem:[%s6039_s3 + $0x60] sm:$0xff]  }
 0xeec   : > { %v2871_v36 = vrot.slane %v2863_v16, %v5276_v2  ;;  %v2878_v34 = vrot.slane %v2864_v18, %v5276_v2  ;;  %v2887_v35 = vrot.slane %v2879_v31, %v5276_v2  ;;  %v2894_v37 = vrot.slane %v2880_v33, %v5276_v2  ;;  %v4943_v38 = vpop.eup %4942 }
 0xeed   : > { %v3204_v3 = vmul.f32 %v4943_v38, %v5756_v30 }
 0xeee   : > { %v2899_v42 = vcombine.low %v2871_v36, %v2878_v34  ;;  %v4286_v39 = vcombine.high %v2871_v36, %v2878_v34  ;;  %v2915_v40 = vcombine.low %v2887_v35, %v2894_v37  ;;  %v4287_v41 = vcombine.high %v2887_v35, %v2894_v37 }
 0xeef   : > { %v3208_v15 = vpack.c.bf16 %v3204_v3, %v3204_v3 }
 0xef0   : > { %v2906_v43 = vrot.slane %v2899_v42, %v5273_v59  ;;  %v2914_v44 = vrot.slane %v4286_v39, %v5273_v59  ;;  %v2922_v45 = vrot.slane %v2915_v40, %v5273_v59  ;;  %v2930_v46 = vrot.slane %v4287_v41, %v5273_v59 }
 0xef2   : > { %v2931_v47 = vcombine.low %v2906_v43, %v2914_v44  ;;  %v2947_v48 = vcombine.low %v2922_v45, %v2930_v46  ;;  %v2932_v49 = vcombine.high %v2906_v43, %v2914_v44  ;;  %v2948_v50 = vcombine.high %v2922_v45, %v2930_v46 }
 0xef4   : > { %v2939_v52 = vrot.slane %v2931_v47, %v5276_v2  ;;  %v2955_v54 = vrot.slane %v2947_v48, %v5276_v2  ;;  %v2946_v56 = vrot.slane %v2932_v49, %v5276_v2  ;;  %v2962_v57 = vrot.slane %v2948_v50, %v5276_v2 }
 0xef6   : > { %v2963_v58 = vcombine.low %v2939_v52, %v2955_v54  ;;  %v2964_v60 = vcombine.high %v2939_v52, %v2955_v54  ;;  %v2965_v61 = vcombine.low %v2946_v56, %v2962_v57  ;;  %v2966_v63 = vcombine.high %v2946_v56, %v2962_v57 }
 0xef8   : > { %v2967_v4 = vpack.c.bf16 %v2963_v58, %v2963_v58  ;;  %v2968_v5 = vpack.c.bf16 %v2964_v60, %v2964_v60  ;;  %v2969_v10 = vpack.c.bf16 %v2965_v61, %v2965_v61  ;;  %v2970_v12 = vpack.c.bf16 %v2966_v63, %v2966_v63  ;;  %v4868_v60 = vld [vmem:[%s6039_s3 + $0x70] sm:$0xff]  }
 0xefa   : > { %v3215_v7 = vsel %vm1450_vm4, %v2967_v4, 0  ;;  %v3261_v9 = vsel %vm1450_vm4, %v2968_v5, 0  ;;  %v3307_v62 = vsel %vm1450_vm4, %v2969_v10, 0  ;;  %v3353_v30 = vsel %vm1450_vm4, %v2970_v12, 0  ;;  %v4869_v10 = vld [vmem:[%s6039_s3 + $0x78] sm:$0xff]  }
 0xefb   : > { %4660 = vmatpush3.bf16.msra.mxu0 %v3215_v7  ;;  %4666 = vmatpush3.bf16.msra.mxu1 %v3261_v9 }
 0xefc   : > { %4671 = vmatprep.subr.bf16.mxu0 %v5017_v0  ;;  %4677 = vmatprep.subr.bf16.mxu1 %v5017_v0 }
 0xefe   : > { %4662 = vmatmul.mubr.msk.bf16.vlgmr.msra.gmra.mrb[24].mxu0 %vm1398_vm3, %v3207_v14  ;;  %4668 = vmatmul.mubr.msk.bf16.vlgmr.msra.gmra.mrb[52].mxu1 %vm1398_vm3, %v3208_v15 }
 0xeff   : > { %4672 = vmatpush3.bf16.msra.mxu0 %v3307_v62  ;;  %4678 = vmatpush3.bf16.msra.mxu1 %v3353_v30 }
 0xf00   : > { %4673 = vmatprep.mubr.msk.bf16.mxu0 %vm5019_vm0, %v5017_v0  ;;  %4679 = vmatprep.mubr.msk.bf16.mxu1 %vm5019_vm0, %v5017_v0 }
 0xf01   : > { %4683 = vmatprep.subr.bf16.mxu0 %v5017_v0 }
 0xf0e   : > { %v3195_v17 = vpop.xlane.xlu0 %3194 }
 0xf0f   : > { %4944 = vrcp.f32 %v3195_v17 }
 0xf16   : > { %v3198_v6 = vpop.xlane.xlu1 %3197 }
 0xf17   : > { %4946 = vrcp.f32 %v3198_v6 }
 0xf19   : > { %v4945_v8 = vpop.eup %4944 }
 0xf1a   : > { %v3205_v19 = vmul.f32 %v4945_v8, %v5764_v11  ;;  %v4863_v11 = vld [vmem:[%s6039_s3 + $0x48] sm:$0xff]  }
 0xf1c   : > { %v3209_v20 = vpack.c.bf16 %v3205_v19, %v3205_v19 }
 0xf1e   : > { %4674 = vmatmul.mubr.msk.bf16.vlgmr.msra.gmra.mrb[28].mxu0 %vm1398_vm3, %v3209_v20 }
 0xf1f   : > { %4699 = vmatprep.mubr.msk.bf16.mxu0 %vm5019_vm0, %v5017_v0  ;;  %4684 = vmatpush3.bf16.msra.mxu0 %v4862_v24 }
 0xf20   : > { %4685 = vmatprep.subr.bf16.mxu0 %v5017_v0 }
 0xf21   : > { %v4947_v21 = vpop.eup %4946 }
 0xf22   : > { %v3206_v22 = vmul.f32 %v4947_v21, %v5768_v13  ;;  %v4864_v13 = vld [vmem:[%s6039_s3 + $0x50] sm:$0xff]  }
 0xf23   : > { %4686 = vmatpush3.bf16.msra.mxu0 %v4863_v11 }
 0xf24   : > { %v3210_v23 = vpack.c.bf16 %v3206_v22, %v3206_v22  ;;  %4687 = vmatprep.subr.bf16.mxu0 %v5017_v0 }
 0xf26   : > { %4680 = vmatmul.mubr.msk.bf16.vlgmr.msra.gmra.mrb[56].mxu1 %vm1398_vm3, %v3210_v23 }
 0xf27   : > { %3825 = vmatprep.mubr.bf16.mxu1 %v5018_v25  ;;  %4688 = vmatpush3.bf16.msra.mxu0 %v4864_v13  ;;  %v4865_v25 = vld [vmem:[%s6039_s3 + $0x58] sm:$0xff]  }
 0xf28   : > { %4689 = vmatprep.subr.bf16.mxu0 %v5017_v0 }
 0xf2b   : > { %4690 = vmatpush3.bf16.msra.mxu0 %v4865_v25 }
 0xf2c   : > { %4691 = vmatprep.subr.bf16.mxu0 %v5017_v0 }
 0xf2f   : > { %4692 = vmatpush3.bf16.msra.mxu0 %v4866_v26 }
 0xf30   : > { %4693 = vmatprep.subr.bf16.mxu0 %v5017_v0 }
 0xf33   : > { %4694 = vmatpush3.bf16.msra.mxu0 %v4867_v27 }
 0xf34   : > { %4695 = vmatprep.subr.bf16.mxu0 %v5017_v0 }
 0xf37   : > { %4696 = vmatpush3.bf16.msra.mxu0 %v4868_v60  ;;  %v4897_v60 = vld [vmem:[%s6044_s8 + $0x88] sm:$0xff]  }
 0xf38   : > { %4697 = vmatprep.subr.bf16.mxu0 %v5017_v0 }
 0xf3b   : > { %4698 = vmatpush3.bf16.msra.mxu0 %v4869_v10 }
 0xfd1   : > { %v3251_v28 = vpop.f32.mrb[24].mxu0  ;;  %v3297_v16 = vpop.f32.mrb[52].mxu1 }
 0xfd2   : > { %v4663_v18 = vpop.f32.mrb[25].mxu0  ;;  %v4669_v31 = vpop.f32.mrb[53].mxu1 }
 0xfd3   : > { %v3254_v33 = vpop.f32.mrb[26].mxu0  ;;  %v3300_v36 = vpop.f32.mrb[54].mxu1 }
 0xfd4   : > { %v4664_v34 = vpop.f32.mrb[27].mxu0  ;;  %v4670_v35 = vpop.f32.mrb[55].mxu1 }
 0xfd5   : > { %v4870_v34 = vld [vmem:[%s6042_s6 + $0x80] ss:$8 sps:$4 sm:$0xff]   ;;  %v4872_v35 = vld [vmem:[%s6042_s6 + $0x84] ss:$8 sps:$4 sm:$0xff]  }
 0xfd6   : > { %3793 = vmatprep.subr.bf16.mxu1 %v4872_v35 }
 0xfd7   : > { %3794 = vmatpush1.bf16.msra.mxu1 %v4870_v34 }
 0xff1   : > { %v3343_v37 = vpop.f32.mrb[28].mxu0 }
 0xff2   : > { %v3395_v42 = vcombine.low %v3251_v28, %v3343_v37  ;;  %v3396_v39 = vcombine.high %v3251_v28, %v3343_v37  ;;  %v4675_v40 = vpop.f32.mrb[29].mxu0  ;;  %v4875_v37 = vld [vmem:[%s6042_s6 + $0x94] ss:$8 sps:$4 sm:$0xff]  }
 0xff3   : > { %v3346_v41 = vpop.f32.mrb[30].mxu0  ;;  %3795 = vmatprep.subr.bf16.mxu1 %v4875_v37 }
 0xff4   : > { %v4676_v43 = vpop.f32.mrb[31].mxu0  ;;  %v3403_v49 = vrot.slane %v3395_v42, %v5273_v59  ;;  %v3410_v50 = vrot.slane %v3396_v39, %v5273_v59  ;;  %v4878_v42 = vld [vmem:[%s6042_s6 + $0xa4] ss:$8 sps:$4 sm:$0xff]   ;;  %v4876_v39 = vld [vmem:[%s6042_s6 + $0xa0] ss:$8 sps:$4 sm:$0xff]  }
 0xff9   : > { %v3389_v44 = vpop.f32.mrb[56].mxu1 }
 0xffa   : > { %v3411_v45 = vcombine.low %v3297_v16, %v3389_v44  ;;  %v3412_v46 = vcombine.high %v3297_v16, %v3389_v44  ;;  %v4681_v47 = vpop.f32.mrb[57].mxu1 }
 0xffb   : > { %v3392_v48 = vpop.f32.mrb[58].mxu1  ;;  %v4882_v47 = vld [vmem:[%s6042_s6 + $0xc0] ss:$8 sps:$4 sm:$0xff]  }
 0xffc   : > { %v3419_v51 = vrot.slane %v3411_v45, %v5273_v59  ;;  %v3426_v52 = vrot.slane %v3412_v46, %v5273_v59  ;;  %v4682_v54 = vpop.f32.mrb[59].mxu1  ;;  %v4881_v45 = vld [vmem:[%s6042_s6 + $0xb4] ss:$8 sps:$4 sm:$0xff]   ;;  %v4879_v46 = vld [vmem:[%s6042_s6 + $0xb0] ss:$8 sps:$4 sm:$0xff]  }
 0xffd   : > { %v4884_v48 = vld [vmem:[%s6042_s6 + $0xc4] ss:$8 sps:$4 sm:$0xff]   ;;  %v4893_v54 = vld [vmem:[%s6042_s6 + $0xf4] ss:$8 sps:$4 sm:$0xff]  }
 0xffe   : > { %v3427_v56 = vcombine.low %v3403_v49, %v3419_v51  ;;  %v3428_v57 = vcombine.high %v3403_v49, %v3419_v51  ;;  %v3443_v38 = vcombine.low %v3410_v50, %v3426_v52  ;;  %v3444_v58 = vcombine.high %v3410_v50, %v3426_v52  ;;  %v4887_v49 = vld [vmem:[%s6042_s6 + $0xd4] ss:$8 sps:$4 sm:$0xff]   ;;  %v4885_v50 = vld [vmem:[%s6042_s6 + $0xd0] ss:$8 sps:$4 sm:$0xff]   ;;  %v4890_v51 = vld [vmem:[%s6042_s6 + $0xe4] ss:$8 sps:$4 sm:$0xff]  }
 0xfff   : > { %v4888_v52 = vld [vmem:[%s6042_s6 + $0xe0] ss:$8 sps:$4 sm:$0xff]  }
0x1000   : > { %v3435_v61 = vrot.slane %v3427_v56, %v5276_v2  ;;  %v3442_v63 = vrot.slane %v3428_v57, %v5276_v2  ;;  %v3451_v1 = vrot.slane %v3443_v38, %v5276_v2  ;;  %v3458_v3 = vrot.slane %v3444_v58, %v5276_v2  ;;  %v4891_v56 = vld [vmem:[%s6042_s6 + $0xf0] ss:$8 sps:$4 sm:$0xff]   ;;  %v4894_v57 = vld [vmem:[%s6044_s8 + $0xc0] sm:$0xff]   ;;  %v4896_v58 = vld [vmem:[%s6044_s8 + $0xc8] sm:$0xff]  }
0x1001   : > { %v4895_v38 = vld [vmem:[%s6044_s8 + $0x80] sm:$0xff]   ;;  %4505 = vmatprep.subr.bf16.mxu0 %v4894_v57 }
0x1002   : > { %v3463_v4 = vcombine.low %v3435_v61, %v3442_v63  ;;  %v4296_v5 = vcombine.high %v3435_v61, %v3442_v63  ;;  %v3479_v7 = vcombine.low %v3451_v1, %v3458_v3  ;;  %v4297_v9 = vcombine.high %v3451_v1, %v3458_v3  ;;  %v4898_v61 = vld [vmem:[%s6044_s8 + $0xd0] sm:$0xff]   ;;  %v4900_v1 = vld [vmem:[%s6044_s8 + $0xd8] sm:$0xff]  }
0x1003   : > { %v4899_v63 = vld [vmem:[%s6044_s8 + $0x90] sm:$0xff]   ;;  %v4901_v3 = vld [vmem:[%s6044_s8 + $0x98] sm:$0xff]  }
0x1004   : > { %v3470_v12 = vrot.slane %v3463_v4, %v5273_v59  ;;  %v3478_v14 = vrot.slane %v4296_v5, %v5273_v59  ;;  %v3486_v15 = vrot.slane %v3479_v7, %v5273_v59  ;;  %v3494_v62 = vrot.slane %v4297_v9, %v5273_v59  ;;  %v4902_v4 = vld [vmem:[%s6044_s8 + $0xe0] sm:$0xff]   ;;  %v4904_v7 = vld [vmem:[%s6044_s8 + $0xe8] sm:$0xff]  }
0x1005   : > { %v4903_v5 = vld [vmem:[%s6044_s8 + $0xa0] sm:$0xff]   ;;  %v4905_v9 = vld [vmem:[%s6044_s8 + $0xa8] sm:$0xff]  }
0x1006   : > { %v3496_v30 = vcombine.high %v3470_v12, %v3478_v14  ;;  %v3512_v17 = vcombine.high %v3486_v15, %v3494_v62  ;;  %v3495_v0 = vcombine.low %v3470_v12, %v3478_v14  ;;  %v3511_v6 = vcombine.low %v3486_v15, %v3494_v62  ;;  %v4324_v15 = vld [vmem:[%s6046_s10 + $0x1] ss:$0 sm:$0xff] }
0x1008   : > { %v3510_v8 = vrot.slane %v3496_v30, %v5276_v2  ;;  %v3526_v19 = vrot.slane %v3512_v17, %v5276_v2  ;;  %v3503_v20 = vrot.slane %v3495_v0, %v5276_v2  ;;  %v3519_v21 = vrot.slane %v3511_v6, %v5276_v2  ;;  %v4325_v17 = vld [vmem:[%s6047_s11 + $0x1] ss:$0 sm:$0xff] }
0x100a   : > { %v3529_v22 = vcombine.low %v3510_v8, %v3526_v19  ;;  %v3528_v23 = vcombine.high %v3503_v20, %v3519_v21  ;;  %v3530_v24 = vcombine.high %v3510_v8, %v3526_v19  ;;  %v3527_v11 = vcombine.low %v3503_v20, %v3519_v21  ;;  %v4906_v19 = vld [vmem:[%s6044_s8 + $0xf0] sm:$0xff]   ;;  %v4908_v21 = vld [vmem:[%s6044_s8 + $0xf8] sm:$0xff]  }
0x100b   : > { %v4907_v20 = vld [vmem:[%s6044_s8 + $0xb0] sm:$0xff]  }
0x100c   : > { %3536 = vrot.lane.b32.xlu1 %v3529_v22, %s5022_s29  ;;  %3532 = vrot.lane.b32.xlu0 %v3528_v23, %s5020_s15  ;;  %v4909_v22 = vld [vmem:[%s6044_s8 + $0xb8] sm:$0xff]   ;;  %v4342_v23 = vld [vmem:[%s6043_s7 + $0x2] sm:$0x3]  ;;  %s4412_s15 = sshll.u32 %s5122_s17, 7  ;;  %s5025_s17 = smov [#allocation2]  }
0x100d   : > { %s5994_s25 = scalar_lea.hbm %s6050_s14, %s4412_s15 }
0x1010   : > { %3540 = vrot.lane.b32.xlu0 %v3530_v24, %s5021_s22  ;;  %v3706_v24 = vrot.slane %v4342_v23, %v1939_v29  ;;  %s471_s22 = scalar_lea.vmem [#allocation2], %s4134_s28  ;;  %s4957_s28 = sshll.u32 %s5025_s17, 4  ;;  %s4958_s28 = int_to_ptr.vmem [resolvable:$false] %s4957_s28 }
0x1011   : > { %s4059_s29 = sshll.u32 %s471_s22, 4  ;;  %s4959_s20 = scalar_lea.vmem %s4958_s28, 256  ;;  %s5996_s29 = int_to_ptr.vmem [resolvable:$true] %s4059_s29 }
0x1012   : > { %s4953_s18 = scalar_lea.vmem %s5996_s29, 128  ;;  %p4960_p0 = scmp.lt.s32.totalorder %s5996_s29, %s4958_s28 }
0x1013   : > { %p4954_p11 = scmp.ne.s32.totalorder %s5996_s29, %s4953_s18  ;;  %p4961_p1 = scmp.lt.s32.totalorder %s4959_s20, %s4953_s18 }
0x1015   : > { %p4955_p12 = pnand %p4954_p11, %p5139_p5  ;;  %p4962_p2 = por %p4961_p1, %p4960_p0 }
0x1017   : > { %p4956_p13 = pneg %p4955_p12 }
0x1019   : > { %p4963_p3 = pnand %p4962_p2, %p4956_p13 }
0x107e   : > { %v3533_v59 = vpop.permute.xlu0 %3532  ;;  %v3537_v13 = vpop.permute.xlu1 %3536 }
0x107f   : > { %v3543_v25 = vsel %vm1205_vm1, %v3527_v11, %v3533_v59  ;;  %v3710_v11 = vrot.slane %v4342_v23, %v1943_v32 }
0x1080   : > { %v3544_v27 = vsel %vm1781_vm5, %v3543_v25, %v3537_v13 }
0x1082   : > { %v3541_v26 = vpop.permute.xlu0 %3540 }
0x1083   : > { %v3545_v28 = vsel %vm1783_vm6, %v3544_v27, %v3541_v26 }
0x1084   : > { %v3546_v2 = vpack.c.bf16 %v3545_v28, %v3545_v28 }
0x1086   : > { %4700 = vmatmul.mubr.bf16.vlgmr.msra.gmra.mrb[32].mxu0 %v3546_v2 }
0x1087   : > { %4506 = vmatpush3.bf16.msra.mxu0 %v4895_v38 }
0x1088   : > { %4507 = vmatprep.subr.bf16.mxu0 %v4896_v58 }
0x108b   : > { %4508 = vmatpush3.bf16.msra.mxu0 %v4897_v60 }
0x108c   : > { %4509 = vmatprep.subr.bf16.mxu0 %v4898_v61 }
0x108f   : > { %4510 = vmatpush3.bf16.msra.mxu0 %v4899_v63 }
0x1090   : > { %4511 = vmatprep.subr.bf16.mxu0 %v4900_v1 }
0x1093   : > { %4512 = vmatpush3.bf16.msra.mxu0 %v4901_v3 }
0x1094   : > { %4513 = vmatprep.subr.bf16.mxu0 %v4902_v4 }
0x1097   : > { %4514 = vmatpush3.bf16.msra.mxu0 %v4903_v5 }
0x1098   : > { %4515 = vmatprep.subr.bf16.mxu0 %v4904_v7 }
0x109b   : > { %4516 = vmatpush3.bf16.msra.mxu0 %v4905_v9 }
0x109c   : > { %4517 = vmatprep.subr.bf16.mxu0 %v4906_v19 }
0x109f   : > { %4518 = vmatpush3.bf16.msra.mxu0 %v4907_v20 }
0x10a0   : > { %4519 = vmatprep.subr.bf16.mxu0 %v4908_v21 }
0x10a3   : > { %4520 = vmatpush3.bf16.msra.mxu0 %v4909_v22 }
0x1159   : > { %v3646_v16 = vpop.f32.mrb[32].mxu0 }
0x115a   : > { %v5866_v18 = vadd.f32 %v3646_v16, %v5587_v53  ;;  %v4701_v31 = vpop.f32.mrb[33].mxu0  ;;  %v4873_v53 = vld [vmem:[%s6042_s6 + $0x90] ss:$8 sps:$4 sm:$0xff]  }
0x115b   : > { %v3649_v33 = vpop.f32.mrb[34].mxu0  ;;  %3796 = vmatpush1.bf16.msra.mxu1 %v4873_v53 }
0x115c   : > { %3657 = vadd.xlane.f32.xlu1 %v5866_v18  ;;  %v4702_v36 = vpop.f32.mrb[35].mxu0  ;;  %3797 = vmatprep.subr.bf16.mxu1 %v4878_v42 }
0x115f   : > { %3798 = vmatpush1.bf16.msra.mxu1 %v4876_v39 }
0x1160   : > { %3799 = vmatprep.subr.bf16.mxu1 %v4881_v45 }
0x1163   : > { %3800 = vmatpush1.bf16.msra.mxu1 %v4879_v46  ;;  %v4409_v46 = vld [vmem:[%s6048_s12] ss:$0 sm:$0xff] }
0x1164   : > { %3801 = vmatprep.subr.bf16.mxu1 %v4884_v48  ;;  %v4410_v48 = vld [vmem:[%s6049_s13] ss:$0 sm:$0xff] }
0x1167   : > { %3802 = vmatpush1.bf16.msra.mxu1 %v4882_v47 }
0x1168   : > { %3803 = vmatprep.subr.bf16.mxu1 %v4887_v49 }
0x116b   : > { %3804 = vmatpush1.bf16.msra.mxu1 %v4885_v50 }
0x116c   : > { %3805 = vmatprep.subr.bf16.mxu1 %v4890_v51 }
0x116f   : > { %3806 = vmatpush1.bf16.msra.mxu1 %v4888_v52 }
0x1170   : > { %3807 = vmatprep.subr.bf16.mxu1 %v4893_v54 }
0x1173   : > { %3808 = vmatpush1.bf16.msra.mxu1 %v4891_v56 }
0x11e9   : > { %v3658_v40 = vpop.xlane.xlu1 %3657 }
0x11ea   : > { %v3659_v41 = vmul.f32 0.0078125, %v3658_v40 }
0x11ec   : > { %v3660_v43 = vsub.f32 %v5866_v18, %v3659_v41 }
0x11ee   : > { %v3661_v44 = vmul.f32 %v3660_v43, %v3660_v43  ;;  %v3673_v62 = vmul.f32 %v4324_v15, %v3660_v43 }
0x11f0   : > { %3662 = vadd.xlane.f32.xlu0 %v3661_v44 }
0x127d   : > { %v3663_v10 = vpop.xlane.xlu0 %3662 }
0x127e   : > { %v3664_v12 = vmul.f32 0.007874016, %v3663_v10 }
0x1280   : > { %v3665_v14 = vadd.f32 1e-12, %v3664_v12 }
0x1282   : > { %4948 = vrsqrt.f32 %v3665_v14 }
0x128c   : > { %v4949_v30 = vpop.eup %4948 }
0x128d   : > { %v3674_v0 = vmul.f32 %v4949_v30, %v3673_v62 }
0x128f   : > { %v3681_v6 = vadd.f32 %v4325_v17, %v3674_v0 }
0x1291   : > { %v3682_v8 = vpack.c.bf16 %v3681_v6, %v3681_v6 }
0x1293   : > { %3826 = vmatmul.mubr.bf16.vlgmr.msra.gmra.mrb[60].mxu1 %v3682_v8 }
0x1366   : > { %v3827_v59 = vpop.f32.mrb[60].mxu1 }
0x1367   : > { %v3828_v13 = vadd.f32 %v3827_v59, %v3706_v24  ;;  %v3829_v25 = vpop.f32.mrb[61].mxu1 }
0x1368   : > { %v3830_v26 = vadd.f32 %v3829_v25, %v3710_v11  ;;  %v3831_v27 = vpop.f32.mrb[62].mxu1 }
0x1369   : > { %v3834_v28 = vmax.f32 %v3828_v13, 0.0  ;;  %v3832_v2 = vpop.f32.mrb[63].mxu1 }
0x136a   : > { %v3835_v16 = vmax.f32 %v3830_v26, 0.0 }
0x136b   : > { %v3836_v33 = vpack.c.bf16 %v3834_v28, %v3834_v28 }
0x136c   : > { %v3837_v31 = vpack.c.bf16 %v3835_v16, %v3835_v16 }
0x136e   : > { %3999 = vmatprep.mubr.bf16.mxu0 %v3837_v31 }
0x136f   : > { %4000 = vmatmul.mubr.bf16.vlgmr.msra.gmra.mrb[36].mxu0 %v3836_v33 }
0x1442   : > { %v4521_v36 = vpop.f32.mrb[36].mxu0 }
0x1443   : > { %v4522_v34 = vpop.f32.mrb[37].mxu0 }
0x1444   : > { %v4523_v35 = vadd.f32 %v4522_v34, %v4521_v36  ;;  %v4524_v29 = vpop.f32.mrb[38].mxu0 }
0x1445   : > { %v4525_v37 = vpop.f32.mrb[39].mxu0 }
0x1446   : > { %v4007_v32 = vadd.f32 %v4523_v35, %v5866_v18 }
0x1448   : > { %v4016_v53 = vadd.f32 %v4408_v55, %v4007_v32 }
0x144a   : > { %4019 = vadd.xlane.f32.xlu0 %v4016_v53 }
0x14d7   : > { %v4020_v42 = vpop.xlane.xlu0 %4019 }
0x14d8   : > { %v4021_v39 = vmul.f32 0.0078125, %v4020_v42 }
0x14da   : > { %v4022_v40 = vsub.f32 %v4016_v53, %v4021_v39 }
0x14dc   : > { %v4023_v41 = vmul.f32 %v4022_v40, %v4022_v40  ;;  %v4035_v18 = vmul.f32 %v4409_v46, %v4022_v40 }
0x14de   : > { %4024 = vadd.xlane.f32.xlu1 %v4023_v41 }
0x156b   : > { %v4025_v43 = vpop.xlane.xlu1 %4024 }
0x156c   : > { %v4026_v44 = vmul.f32 0.007874016, %v4025_v43 }
0x156e   : > { %v4027_v45 = vadd.f32 1e-12, %v4026_v44 }
0x1570   : > { %4950 = vrsqrt.f32 %v4027_v45 }
0x157a   : > { %v4951_v47 = vpop.eup %4950 }
0x157b   : > { %v4036_v49 = vmul.f32 %v4951_v47, %v4035_v18 }
0x157d   : > { %v4043_v50 = vadd.f32 %v4410_v48, %v4036_v49 }
0x157f   : > { %4044 = vst [vmem:[%s471_s22] sm:$0xff] %v4043_v50 }
0x1580   : > { %4966 = shalt.err (!%p4963_p3)
}
0x1581   : > { %s4967_s27 = scalar_lea.hbm %s5994_s25, 128  ;;  %s4971_s15 = scalar_lea.hbm %s6050_s14, 256 }
0x1582   : > { %p4968_p4 = scmp.ne.s32.totalorder %s5994_s25, %s4967_s27  ;;  %p4972_p9 = scmp.lt.u32.totalorder %s5994_s25, %s6050_s14 }
0x1583   : > { %p4973_p10 = scmp.lt.u32.totalorder %s4971_s15, %s4967_s27  ;;  %p4975_p12 = scmp.lt.u32.totalorder %s4967_s27, %s5994_s25 }
0x1584   : > { %p4969_p7 = pnand %p4968_p4, %p5139_p5 }
0x1585   : > { %p4974_p11 = por %p4973_p10, %p4972_p9 }
0x1586   : > { %p4970_p8 = pneg %p4969_p7 }
0x1587   : > { %p4976_p13 = por %p4975_p12, %p4974_p11 }
0x1589   : > { %p4977_p0 = pnand %p4976_p13, %p4970_p8 }
0x158b   : > { %4980 = shalt.err (!%p4977_p0)
}
0x158c   : > { %4703 = dma.vmem_to_hbm [thread:$0]  (%p5139_p5), %s5996_s29, 128, %s5994_s25, %s4046_s26  }
0x158d PF: > { %s6065_s24 = sld [smem:[#allocation7_spill]]  ;;  %s6066_s18 = sld [smem:[#allocation5_spill]] }
0x1593   : > { %p4709_p1 = scmp.ge.s32.totalorder %s6065_s24, 2  ;;  %s4071_s28 = sand.u32 1, %s6066_s18  }
0x1594   : > { %s4072_s20 = scalar_lea.sflag [#allocation3], %s4071_s28 }
0x1595   : > { %p4706_p2 = pnand %p4709_p1, %p5143_p6 }
0x1597   : > { %4998 = dma.done.wait (!%p4706_p2), %s4072_s20, 128  }
0x1598   : > { %5000 = vsyncadd (!%p4706_p2), %s4072_s20, 4294967168  ;;  %s6068_s16 = sld [smem:[#allocation8_spill]]  ;;  %s6069_s27 = sld [smem:[#allocation6_spill]] }
0x1599   : > { %s6070_s15 = sld [smem:[#allocation9_spill]]  ;;  %s6071_s29 = smov %s5007_s30 }
0x159e   : > { %p24_p3 = scmp.ge.s32.totalorder %s6068_s16, 4   ;;  %s6072_s30 = smov %s6069_s27 }
0x15a0   :  { %26 = sbr.rel (!%p24_p3) target bundleno = 3 (0x3), region = 124 }
0x15a7   :  { %4077 = vsyncpa [#allocation3], 1 }
0x15a8   :  { %4079 = vsyncpa [#allocation3 + $0x1], 1 }

</bundles_post_ra>
